<compile_context>
chip_gen: v7x
topology: tpu7x:2x2x1
jax: 0.10.0
libtpu: 0.0.40
codegen_flags: <defaults>
</compile_context>

<pallas_src>
import math

import jax
import jax.numpy as jnp
from jax.experimental import pallas as pl
from jax.experimental.pallas import tpu as pltpu

# ---- model configuration (consistent with the PyTorch module) --------------
FEAT = 16
NUM_CLASS = 10
K_SIZES = (3, 5)                 # atten_kerns (odd, as the module requires)
CHS = (FEAT, 64, 128, 256)
NUM_LAYERS = len(CHS) - 1
MLP_DIMS = ((256, 128), (128, 64), (64, NUM_CLASS))

# Lane-dense padded sizes used inside the kernel (padding is numerically exact).
CP = (128, 128, 256)             # padded per-layer channel counts
IN_P = (FEAT, 128, 128)          # padded linear input dims
MLP_IN_P = (256, 128, 128)
MLP_OUT_P = (128, 128, 128)
OUT_PAD = 128                    # lane-dense output width (>= NUM_CLASS)

TOTAL_N = 64                     # total batch processed per call
TB = 8                           # rows per grid step (one batch tile)
N_TAPS = sum(K_SIZES)            # 8 depthwise taps total per layer


def _sigmoid(x):
    # exp is an EUP-slot op (otherwise idle); exact (non-approx) reciprocal.
    return pl.reciprocal(1.0 + jnp.exp(-x), approx=False)


# ---------------------------- Pallas kernel ---------------------------------
def mulanet_kernel(*refs):
    # refs = [x, (W, b, tapmask, wmix) x 3 layers, (W, b) x 3 mlp, out]
    x_ref = refs[0]
    out_ref = refs[-1]
    w = refs[1:-1]

    h = x_ref[...]                                   # (TB, FEAT) f32
    idx = 0

    # --- attention-augmented layers: Linear + ReLU + MultiLocalAtten --------
    for li in range(NUM_LAYERS):
        w_ref, b_ref, tap_ref, mix_ref = w[idx], w[idx + 1], w[idx + 2], w[idx + 3]
        idx += 4
        cp = CP[li]

        # Linear + ReLU (bf16 weights x bf16 acts, f32 accumulate on the MXU).
        h = jnp.maximum(
            jnp.dot(h.astype(jnp.bfloat16), w_ref[...],
                    preferred_element_type=jnp.float32) + b_ref[...], 0.0)

        # LocalAtten1D depthwise convs: shifted copies of h (XLU roll) times
        # host-precomputed (tap * boundary-mask) rows — no band matrices.
        tm = tap_ref[...]                            # (N_TAPS, cp) f32
        parts = []
        row = 0
        for k in K_SIZES:
            pad = (k - 1) // 2
            att = jnp.zeros_like(h)
            for j in range(k):
                d = j - pad
                shifted = h if d == 0 else pltpu.roll(h, (-d) % cp, axis=1)
                att = att + shifted * tm[row:row + 1, :]
                row += 1
            parts.append((h * _sigmoid(att)).astype(jnp.bfloat16))

        # K aligned cp-wide chunks -> single (K*cp, cp) mixing matmul.
        out_cat = jnp.concatenate(parts, axis=-1)    # (TB, K*cp) bf16
        h = jnp.dot(out_cat, mix_ref[...], preferred_element_type=jnp.float32)

    # --- MLP head: Flatten (identity on (TB, 256)) + 3 Linears ---------------
    for mi in range(len(MLP_DIMS)):
        w_ref, b_ref = w[idx], w[idx + 1]
        idx += 2
        h = jnp.dot(h.astype(jnp.bfloat16), w_ref[...],
                    preferred_element_type=jnp.float32) + b_ref[...]
        if mi < len(MLP_DIMS) - 1:
            h = jnp.maximum(h, 0.0)

    out_ref[...] = h                                 # lane-dense (TB, 128) store


# ------------------------- host-side weight prep -----------------------------
def _tapmask(local_ws, cp):
    """Per-tap rows of (tap_value * boundary_mask), shape (N_TAPS, cp)."""
    rows = []
    c = jnp.arange(cp)
    for taps in local_ws:
        k = int(taps.shape[0])
        pad = (k - 1) // 2
        for j in range(k):
            d = j - pad
            valid = (c + d >= 0) & (c + d < cp)
            rows.append(jnp.where(valid, taps[j], 0.0))
    return jnp.stack(rows).astype(jnp.float32)


def prepare_kernel_params(params):
    """One-time layout work: transposes, exact zero-padding to lane-dense
    shapes, bf16 casts, bias pre-broadcast, tap-mask build."""
    kc = len(K_SIZES)
    args = []
    for li, lp in enumerate(params["layers"]):
        cin, cout = CHS[li], CHS[li + 1]
        cin_p, cout_p = IN_P[li], CP[li]
        Wt = jnp.zeros((cin_p, cout_p), jnp.float32).at[:cin, :cout].set(lp["W"].T)
        b = jnp.zeros((cout_p,), jnp.float32).at[:cout].set(lp["b"])
        wmix_t = jnp.transpose(lp["wmix"], (2, 1, 0))            # (K, c_in, c_out)
        wmix_p = (jnp.zeros((kc, cout_p, cout_p), jnp.float32)
                  .at[:, :cout, :cout].set(wmix_t)).reshape(kc * cout_p, cout_p)
        args += [
            Wt.astype(jnp.bfloat16),
            jnp.broadcast_to(b, (TB, cout_p)).astype(jnp.float32),
            _tapmask(lp["local_ws"], cout_p),
            wmix_p.astype(jnp.bfloat16),
        ]

    for mi, (W, b) in enumerate(params["mlp"]):
        dout, din = W.shape
        din_p, dout_p = MLP_IN_P[mi], MLP_OUT_P[mi]
        Wt = jnp.zeros((din_p, dout_p), jnp.float32).at[:din, :dout].set(W.T)
        bp = jnp.zeros((dout_p,), jnp.float32).at[:dout].set(b)
        args += [
            Wt.astype(jnp.bfloat16),
            jnp.broadcast_to(bp, (TB, dout_p)).astype(jnp.float32),
        ]
    return args


# ------------------------------ wrapper --------------------------------------
def mulanet_forward(x, weight_args):
    total_n = x.shape[0]
    assert total_n % TB == 0
    n_steps = total_n // TB

    in_specs = [pl.BlockSpec((TB, FEAT), lambda i: (i, 0))]
    # Weights: constant block index -> DMA'd once, VMEM-resident across grid.
    in_specs += [pl.BlockSpec(w.shape, lambda i: (0, 0)) for w in weight_args]
    out_spec = pl.BlockSpec((TB, OUT_PAD), lambda i: (i, 0))

    # Advisory cost estimate for XLA's scheduler.
    macs = 0
    for li in range(NUM_LAYERS):
        macs += IN_P[li] * CP[li]                       # linear
        macs += N_TAPS * CP[li]                         # depthwise taps
        macs += len(K_SIZES) * CP[li] * CP[li]          # mixing conv
    for mi in range(len(MLP_DIMS)):
        macs += MLP_IN_P[mi] * MLP_OUT_P[mi]
    cost = pl.CostEstimate(
        flops=2 * macs * total_n,
        transcendentals=total_n * len(K_SIZES) * sum(CP),
        bytes_accessed=int(x.nbytes) + total_n * OUT_PAD * 4
        + sum(int(w.nbytes) for w in weight_args))

    out = pl.pallas_call(
        mulanet_kernel,
        out_shape=jax.ShapeDtypeStruct((total_n, OUT_PAD), jnp.float32),
        grid=(n_steps,),
        in_specs=in_specs,
        out_specs=out_spec,
        compiler_params=pltpu.CompilerParams(
            dimension_semantics=("parallel",)),   # v7x: shard tiles on 2 TCs
        cost_estimate=cost,
    )(x, *weight_args)
    return out[:, :NUM_CLASS]


# --------------------- deterministic parameter init --------------------------
def init_params(key):
    layers = []
    for i in range(1, len(CHS)):
        cin, cout = CHS[i - 1], CHS[i]
        key, kw, kmix = jax.random.split(key, 3)
        W = jax.random.normal(kw, (cout, cin), jnp.float32) * math.sqrt(2.0 / cout)
        b = jnp.zeros((cout,), jnp.float32)
        local_ws = []
        for k in K_SIZES:
            key, kk = jax.random.split(key)
            local_ws.append(
                jax.random.normal(kk, (k,), jnp.float32) * math.sqrt(2.0 / k))
        wmix = jax.random.normal(
            kmix, (cout, cout, len(K_SIZES)), jnp.float32
        ) * math.sqrt(2.0 / (cout * len(K_SIZES)))
        layers.append({"W": W, "b": b, "local_ws": local_ws, "wmix": wmix})

    mlp = []
    for (din, dout) in MLP_DIMS:
        key, kw = jax.random.split(key)
        mlp.append((
            jax.random.normal(kw, (dout, din), jnp.float32) * math.sqrt(2.0 / dout),
            jnp.zeros((dout,), jnp.float32),
        ))
    return {"layers": layers, "mlp": mlp}


# -------------------------- pure-JAX reference --------------------------------
def mulanet_ref(x, params):
    h = x
    for lp in params["layers"]:
        h = jnp.maximum(h @ lp["W"].T + lp["b"], 0.0)
        outs = []
        for w in lp["local_ws"]:
            k = w.shape[0]
            pad = (k - 1) // 2
            hp = jnp.pad(h, ((0, 0), (pad, pad)))
            att = sum(w[j] * hp[:, j: j + h.shape[1]] for j in range(k))
            outs.append(h * jax.nn.sigmoid(att))
        stacked = jnp.stack(outs, axis=2)                 # (N, C, K)
        h = jnp.einsum("nck,ock->no", stacked, lp["wmix"])
    (W1, b1), (W2, b2), (W3, b3) = params["mlp"]
    h = jnp.maximum(h @ W1.T + b1, 0.0)
    h = jnp.maximum(h @ W2.T + b2, 0.0)
    return h @ W3.T + b3


# ------------------------------------ main ------------------------------------
if __name__ == "__main__":
    key = jax.random.PRNGKey(0)
    kx, kp = jax.random.split(key)
    params = init_params(kp)
    x = jax.random.normal(kx, (TOTAL_N, FEAT), jnp.float32)

    # One-time weight layout / padding / bf16 preparation.
    weight_args = prepare_kernel_params(params)

    out = mulanet_forward(x, weight_args)
    out = jax.block_until_ready(out)

    ref = mulanet_ref(x, params)
    err = float(jnp.max(jnp.abs(out - ref)))
    # Tolerance covers bf16 weights (sigmoid is now exact).
    tol = 3e-2 * max(1.0, float(jnp.max(jnp.abs(ref))))
    assert out.shape == (TOTAL_N, NUM_CLASS), out.shape
    assert err < tol, f"max abs err {err} exceeds tol {tol}"

    print("KERNEL_OK")
</pallas_src>

<mosaic_0001>
module attributes {stable_mosaic.version = 11 : i64} {
  func.func @mulanet_kernel(%arg0: i32, %arg1: memref<8x16xf32, #tpu.memory_space<vmem>>, %arg2: memref<16x128xbf16, #tpu.memory_space<vmem>>, %arg3: memref<8x128xf32, #tpu.memory_space<vmem>>, %arg4: memref<8x128xf32, #tpu.memory_space<vmem>>, %arg5: memref<256x128xbf16, #tpu.memory_space<vmem>>, %arg6: memref<128x128xbf16, #tpu.memory_space<vmem>>, %arg7: memref<8x128xf32, #tpu.memory_space<vmem>>, %arg8: memref<8x128xf32, #tpu.memory_space<vmem>>, %arg9: memref<256x128xbf16, #tpu.memory_space<vmem>>, %arg10: memref<128x256xbf16, #tpu.memory_space<vmem>>, %arg11: memref<8x256xf32, #tpu.memory_space<vmem>>, %arg12: memref<8x256xf32, #tpu.memory_space<vmem>>, %arg13: memref<512x256xbf16, #tpu.memory_space<vmem>>, %arg14: memref<256x128xbf16, #tpu.memory_space<vmem>>, %arg15: memref<8x128xf32, #tpu.memory_space<vmem>>, %arg16: memref<128x128xbf16, #tpu.memory_space<vmem>>, %arg17: memref<8x128xf32, #tpu.memory_space<vmem>>, %arg18: memref<128x128xbf16, #tpu.memory_space<vmem>>, %arg19: memref<8x128xf32, #tpu.memory_space<vmem>>, %arg20: memref<8x128xf32, #tpu.memory_space<vmem>>) attributes {dimension_semantics = [#tpu.dimension_semantics<parallel>], iteration_bounds = array<i64: 8>, scalar_prefetch = 0 : i64, scratch_operands = 0 : i64, tpu.core_type = #tpu.core_type<tc>, window_params = [{transform_indices = @transform_0, window_bounds = array<i64: 8, 16>}, {pipeline_mode = #tpu.pipeline_mode<synchronous>, transform_indices = @transform_1, window_bounds = array<i64: 16, 128>}, {pipeline_mode = #tpu.pipeline_mode<synchronous>, transform_indices = @transform_2, window_bounds = array<i64: 8, 128>}, {pipeline_mode = #tpu.pipeline_mode<synchronous>, transform_indices = @transform_3, window_bounds = array<i64: 8, 128>}, {pipeline_mode = #tpu.pipeline_mode<synchronous>, transform_indices = @transform_4, window_bounds = array<i64: 256, 128>}, {pipeline_mode = #tpu.pipeline_mode<synchronous>, transform_indices = @transform_5, window_bounds = array<i64: 128, 128>}, {pipeline_mode = #tpu.pipeline_mode<synchronous>, transform_indices = @transform_6, window_bounds = array<i64: 8, 128>}, {pipeline_mode = #tpu.pipeline_mode<synchronous>, transform_indices = @transform_7, window_bounds = array<i64: 8, 128>}, {pipeline_mode = #tpu.pipeline_mode<synchronous>, transform_indices = @transform_8, window_bounds = array<i64: 256, 128>}, {pipeline_mode = #tpu.pipeline_mode<synchronous>, transform_indices = @transform_9, window_bounds = array<i64: 128, 256>}, {pipeline_mode = #tpu.pipeline_mode<synchronous>, transform_indices = @transform_10, window_bounds = array<i64: 8, 256>}, {pipeline_mode = #tpu.pipeline_mode<synchronous>, transform_indices = @transform_11, window_bounds = array<i64: 8, 256>}, {pipeline_mode = #tpu.pipeline_mode<synchronous>, transform_indices = @transform_12, window_bounds = array<i64: 512, 256>}, {pipeline_mode = #tpu.pipeline_mode<synchronous>, transform_indices = @transform_13, window_bounds = array<i64: 256, 128>}, {pipeline_mode = #tpu.pipeline_mode<synchronous>, transform_indices = @transform_14, window_bounds = array<i64: 8, 128>}, {pipeline_mode = #tpu.pipeline_mode<synchronous>, transform_indices = @transform_15, window_bounds = array<i64: 128, 128>}, {pipeline_mode = #tpu.pipeline_mode<synchronous>, transform_indices = @transform_16, window_bounds = array<i64: 8, 128>}, {pipeline_mode = #tpu.pipeline_mode<synchronous>, transform_indices = @transform_17, window_bounds = array<i64: 128, 128>}, {pipeline_mode = #tpu.pipeline_mode<synchronous>, transform_indices = @transform_18, window_bounds = array<i64: 8, 128>}, {transform_indices = @transform_19, window_bounds = array<i64: 8, 128>}]} {
    %c0 = arith.constant 0 : index
    %c0_0 = arith.constant 0 : index
    %0 = vector.load %arg1[%c0, %c0_0] : memref<8x16xf32, #tpu.memory_space<vmem>>, vector<8x16xf32>
    %1 = arith.truncf %0 : vector<8x16xf32> to vector<8x16xbf16>
    %c0_1 = arith.constant 0 : index
    %c0_2 = arith.constant 0 : index
    %2 = vector.load %arg2[%c0_1, %c0_2] : memref<16x128xbf16, #tpu.memory_space<vmem>>, vector<16x128xbf16>
    %cst = arith.constant dense<0.000000e+00> : vector<8x128xf32>
    %3 = tpu.matmul %1, %2, %cst {dimension_numbers = #tpu.dot_dimension_numbers<[1], [0], [0], [1], [0, 0, 1, 1], [], []>} : vector<8x16xbf16>, vector<16x128xbf16>, vector<8x128xf32> -> vector<8x128xf32>
    %c0_3 = arith.constant 0 : index
    %c0_4 = arith.constant 0 : index
    %4 = vector.load %arg3[%c0_3, %c0_4] : memref<8x128xf32, #tpu.memory_space<vmem>>, vector<8x128xf32>
    %5 = arith.addf %3, %4 : vector<8x128xf32>
    %cst_5 = arith.constant 0.000000e+00 : f32
    %6 = vector.broadcast %cst_5 : f32 to vector<8x128xf32>
    %7 = arith.maximumf %5, %6 : vector<8x128xf32>
    %c0_6 = arith.constant 0 : index
    %c0_7 = arith.constant 0 : index
    %8 = vector.load %arg4[%c0_6, %c0_7] : memref<8x128xf32, #tpu.memory_space<vmem>>, vector<8x128xf32>
    %cst_8 = arith.constant 0.000000e+00 : f32
    %9 = vector.broadcast %cst_8 : f32 to vector<8x128xf32>
    %c1_i32 = arith.constant 1 : i32
    %10 = tpu.dynamic_rotate %7 by %c1_i32 dim 1 : vector<8x128xf32>, i32 -> vector<8x128xf32>
    %11 = vector.extract_strided_slice %8 {offsets = [0, 0], sizes = [1, 128], strides = [1, 1]} : vector<8x128xf32> to vector<1x128xf32>
    %12 = vector.broadcast %11 : vector<1x128xf32> to vector<8x128xf32>
    %13 = arith.mulf %10, %12 : vector<8x128xf32>
    %14 = arith.addf %9, %13 : vector<8x128xf32>
    %15 = vector.extract_strided_slice %8 {offsets = [1, 0], sizes = [1, 128], strides = [1, 1]} : vector<8x128xf32> to vector<1x128xf32>
    %16 = vector.broadcast %15 : vector<1x128xf32> to vector<8x128xf32>
    %17 = arith.mulf %7, %16 : vector<8x128xf32>
    %18 = arith.addf %14, %17 : vector<8x128xf32>
    %c127_i32 = arith.constant 127 : i32
    %19 = tpu.dynamic_rotate %7 by %c127_i32 dim 1 : vector<8x128xf32>, i32 -> vector<8x128xf32>
    %20 = vector.extract_strided_slice %8 {offsets = [2, 0], sizes = [1, 128], strides = [1, 1]} : vector<8x128xf32> to vector<1x128xf32>
    %21 = vector.broadcast %20 : vector<1x128xf32> to vector<8x128xf32>
    %22 = arith.mulf %19, %21 : vector<8x128xf32>
    %23 = arith.addf %18, %22 : vector<8x128xf32>
    %cst_9 = arith.constant 0.000000e+00 : f32
    %24 = vector.broadcast %cst_9 : f32 to vector<8x128xf32>
    %25 = arith.subf %24, %23 : vector<8x128xf32>
    %26 = math.exp %25 : vector<8x128xf32>
    %cst_10 = arith.constant 1.000000e+00 : f32
    %27 = vector.broadcast %cst_10 : f32 to vector<8x128xf32>
    %28 = arith.addf %27, %26 : vector<8x128xf32>
    %29 = tpu.reciprocal %28 : vector<8x128xf32> -> vector<8x128xf32>
    %30 = arith.mulf %7, %29 : vector<8x128xf32>
    %31 = arith.truncf %30 : vector<8x128xf32> to vector<8x128xbf16>
    %cst_11 = arith.constant 0.000000e+00 : f32
    %32 = vector.broadcast %cst_11 : f32 to vector<8x128xf32>
    %c2_i32 = arith.constant 2 : i32
    %33 = tpu.dynamic_rotate %7 by %c2_i32 dim 1 : vector<8x128xf32>, i32 -> vector<8x128xf32>
    %34 = vector.extract_strided_slice %8 {offsets = [3, 0], sizes = [1, 128], strides = [1, 1]} : vector<8x128xf32> to vector<1x128xf32>
    %35 = vector.broadcast %34 : vector<1x128xf32> to vector<8x128xf32>
    %36 = arith.mulf %33, %35 : vector<8x128xf32>
    %37 = arith.addf %32, %36 : vector<8x128xf32>
    %c1_i32_12 = arith.constant 1 : i32
    %38 = tpu.dynamic_rotate %7 by %c1_i32_12 dim 1 : vector<8x128xf32>, i32 -> vector<8x128xf32>
    %39 = vector.extract_strided_slice %8 {offsets = [4, 0], sizes = [1, 128], strides = [1, 1]} : vector<8x128xf32> to vector<1x128xf32>
    %40 = vector.broadcast %39 : vector<1x128xf32> to vector<8x128xf32>
    %41 = arith.mulf %38, %40 : vector<8x128xf32>
    %42 = arith.addf %37, %41 : vector<8x128xf32>
    %43 = vector.extract_strided_slice %8 {offsets = [5, 0], sizes = [1, 128], strides = [1, 1]} : vector<8x128xf32> to vector<1x128xf32>
    %44 = vector.broadcast %43 : vector<1x128xf32> to vector<8x128xf32>
    %45 = arith.mulf %7, %44 : vector<8x128xf32>
    %46 = arith.addf %42, %45 : vector<8x128xf32>
    %c127_i32_13 = arith.constant 127 : i32
    %47 = tpu.dynamic_rotate %7 by %c127_i32_13 dim 1 : vector<8x128xf32>, i32 -> vector<8x128xf32>
    %48 = vector.extract_strided_slice %8 {offsets = [6, 0], sizes = [1, 128], strides = [1, 1]} : vector<8x128xf32> to vector<1x128xf32>
    %49 = vector.broadcast %48 : vector<1x128xf32> to vector<8x128xf32>
    %50 = arith.mulf %47, %49 : vector<8x128xf32>
    %51 = arith.addf %46, %50 : vector<8x128xf32>
    %c126_i32 = arith.constant 126 : i32
    %52 = tpu.dynamic_rotate %7 by %c126_i32 dim 1 : vector<8x128xf32>, i32 -> vector<8x128xf32>
    %53 = vector.extract_strided_slice %8 {offsets = [7, 0], sizes = [1, 128], strides = [1, 1]} : vector<8x128xf32> to vector<1x128xf32>
    %54 = vector.broadcast %53 : vector<1x128xf32> to vector<8x128xf32>
    %55 = arith.mulf %52, %54 : vector<8x128xf32>
    %56 = arith.addf %51, %55 : vector<8x128xf32>
    %cst_14 = arith.constant 0.000000e+00 : f32
    %57 = vector.broadcast %cst_14 : f32 to vector<8x128xf32>
    %58 = arith.subf %57, %56 : vector<8x128xf32>
    %59 = math.exp %58 : vector<8x128xf32>
    %cst_15 = arith.constant 1.000000e+00 : f32
    %60 = vector.broadcast %cst_15 : f32 to vector<8x128xf32>
    %61 = arith.addf %60, %59 : vector<8x128xf32>
    %62 = tpu.reciprocal %61 : vector<8x128xf32> -> vector<8x128xf32>
    %63 = arith.mulf %7, %62 : vector<8x128xf32>
    %64 = arith.truncf %63 : vector<8x128xf32> to vector<8x128xbf16>
    %65 = tpu.concatenate %31, %64 in 1 : vector<8x128xbf16>, vector<8x128xbf16> -> vector<8x256xbf16>
    %c0_16 = arith.constant 0 : index
    %c0_17 = arith.constant 0 : index
    %66 = vector.load %arg5[%c0_16, %c0_17] : memref<256x128xbf16, #tpu.memory_space<vmem>>, vector<256x128xbf16>
    %cst_18 = arith.constant dense<0.000000e+00> : vector<8x128xf32>
    %67 = tpu.matmul %65, %66, %cst_18 {dimension_numbers = #tpu.dot_dimension_numbers<[1], [0], [0], [1], [0, 0, 1, 1], [], []>} : vector<8x256xbf16>, vector<256x128xbf16>, vector<8x128xf32> -> vector<8x128xf32>
    %68 = arith.truncf %67 : vector<8x128xf32> to vector<8x128xbf16>
    %c0_19 = arith.constant 0 : index
    %c0_20 = arith.constant 0 : index
    %69 = vector.load %arg6[%c0_19, %c0_20] : memref<128x128xbf16, #tpu.memory_space<vmem>>, vector<128x128xbf16>
    %cst_21 = arith.constant dense<0.000000e+00> : vector<8x128xf32>
    %70 = tpu.matmul %68, %69, %cst_21 {dimension_numbers = #tpu.dot_dimension_numbers<[1], [0], [0], [1], [0, 0, 1, 1], [], []>} : vector<8x128xbf16>, vector<128x128xbf16>, vector<8x128xf32> -> vector<8x128xf32>
    %c0_22 = arith.constant 0 : index
    %c0_23 = arith.constant 0 : index
    %71 = vector.load %arg7[%c0_22, %c0_23] : memref<8x128xf32, #tpu.memory_space<vmem>>, vector<8x128xf32>
    %72 = arith.addf %70, %71 : vector<8x128xf32>
    %cst_24 = arith.constant 0.000000e+00 : f32
    %73 = vector.broadcast %cst_24 : f32 to vector<8x128xf32>
    %74 = arith.maximumf %72, %73 : vector<8x128xf32>
    %c0_25 = arith.constant 0 : index
    %c0_26 = arith.constant 0 : index
    %75 = vector.load %arg8[%c0_25, %c0_26] : memref<8x128xf32, #tpu.memory_space<vmem>>, vector<8x128xf32>
    %cst_27 = arith.constant 0.000000e+00 : f32
    %76 = vector.broadcast %cst_27 : f32 to vector<8x128xf32>
    %c1_i32_28 = arith.constant 1 : i32
    %77 = tpu.dynamic_rotate %74 by %c1_i32_28 dim 1 : vector<8x128xf32>, i32 -> vector<8x128xf32>
    %78 = vector.extract_strided_slice %75 {offsets = [0, 0], sizes = [1, 128], strides = [1, 1]} : vector<8x128xf32> to vector<1x128xf32>
    %79 = vector.broadcast %78 : vector<1x128xf32> to vector<8x128xf32>
    %80 = arith.mulf %77, %79 : vector<8x128xf32>
    %81 = arith.addf %76, %80 : vector<8x128xf32>
    %82 = vector.extract_strided_slice %75 {offsets = [1, 0], sizes = [1, 128], strides = [1, 1]} : vector<8x128xf32> to vector<1x128xf32>
    %83 = vector.broadcast %82 : vector<1x128xf32> to vector<8x128xf32>
    %84 = arith.mulf %74, %83 : vector<8x128xf32>
    %85 = arith.addf %81, %84 : vector<8x128xf32>
    %c127_i32_29 = arith.constant 127 : i32
    %86 = tpu.dynamic_rotate %74 by %c127_i32_29 dim 1 : vector<8x128xf32>, i32 -> vector<8x128xf32>
    %87 = vector.extract_strided_slice %75 {offsets = [2, 0], sizes = [1, 128], strides = [1, 1]} : vector<8x128xf32> to vector<1x128xf32>
    %88 = vector.broadcast %87 : vector<1x128xf32> to vector<8x128xf32>
    %89 = arith.mulf %86, %88 : vector<8x128xf32>
    %90 = arith.addf %85, %89 : vector<8x128xf32>
    %cst_30 = arith.constant 0.000000e+00 : f32
    %91 = vector.broadcast %cst_30 : f32 to vector<8x128xf32>
    %92 = arith.subf %91, %90 : vector<8x128xf32>
    %93 = math.exp %92 : vector<8x128xf32>
    %cst_31 = arith.constant 1.000000e+00 : f32
    %94 = vector.broadcast %cst_31 : f32 to vector<8x128xf32>
    %95 = arith.addf %94, %93 : vector<8x128xf32>
    %96 = tpu.reciprocal %95 : vector<8x128xf32> -> vector<8x128xf32>
    %97 = arith.mulf %74, %96 : vector<8x128xf32>
    %98 = arith.truncf %97 : vector<8x128xf32> to vector<8x128xbf16>
    %cst_32 = arith.constant 0.000000e+00 : f32
    %99 = vector.broadcast %cst_32 : f32 to vector<8x128xf32>
    %c2_i32_33 = arith.constant 2 : i32
    %100 = tpu.dynamic_rotate %74 by %c2_i32_33 dim 1 : vector<8x128xf32>, i32 -> vector<8x128xf32>
    %101 = vector.extract_strided_slice %75 {offsets = [3, 0], sizes = [1, 128], strides = [1, 1]} : vector<8x128xf32> to vector<1x128xf32>
    %102 = vector.broadcast %101 : vector<1x128xf32> to vector<8x128xf32>
    %103 = arith.mulf %100, %102 : vector<8x128xf32>
    %104 = arith.addf %99, %103 : vector<8x128xf32>
    %c1_i32_34 = arith.constant 1 : i32
    %105 = tpu.dynamic_rotate %74 by %c1_i32_34 dim 1 : vector<8x128xf32>, i32 -> vector<8x128xf32>
    %106 = vector.extract_strided_slice %75 {offsets = [4, 0], sizes = [1, 128], strides = [1, 1]} : vector<8x128xf32> to vector<1x128xf32>
    %107 = vector.broadcast %106 : vector<1x128xf32> to vector<8x128xf32>
    %108 = arith.mulf %105, %107 : vector<8x128xf32>
    %109 = arith.addf %104, %108 : vector<8x128xf32>
    %110 = vector.extract_strided_slice %75 {offsets = [5, 0], sizes = [1, 128], strides = [1, 1]} : vector<8x128xf32> to vector<1x128xf32>
    %111 = vector.broadcast %110 : vector<1x128xf32> to vector<8x128xf32>
    %112 = arith.mulf %74, %111 : vector<8x128xf32>
    %113 = arith.addf %109, %112 : vector<8x128xf32>
    %c127_i32_35 = arith.constant 127 : i32
    %114 = tpu.dynamic_rotate %74 by %c127_i32_35 dim 1 : vector<8x128xf32>, i32 -> vector<8x128xf32>
    %115 = vector.extract_strided_slice %75 {offsets = [6, 0], sizes = [1, 128], strides = [1, 1]} : vector<8x128xf32> to vector<1x128xf32>
    %116 = vector.broadcast %115 : vector<1x128xf32> to vector<8x128xf32>
    %117 = arith.mulf %114, %116 : vector<8x128xf32>
    %118 = arith.addf %113, %117 : vector<8x128xf32>
    %c126_i32_36 = arith.constant 126 : i32
    %119 = tpu.dynamic_rotate %74 by %c126_i32_36 dim 1 : vector<8x128xf32>, i32 -> vector<8x128xf32>
    %120 = vector.extract_strided_slice %75 {offsets = [7, 0], sizes = [1, 128], strides = [1, 1]} : vector<8x128xf32> to vector<1x128xf32>
    %121 = vector.broadcast %120 : vector<1x128xf32> to vector<8x128xf32>
    %122 = arith.mulf %119, %121 : vector<8x128xf32>
    %123 = arith.addf %118, %122 : vector<8x128xf32>
    %cst_37 = arith.constant 0.000000e+00 : f32
    %124 = vector.broadcast %cst_37 : f32 to vector<8x128xf32>
    %125 = arith.subf %124, %123 : vector<8x128xf32>
    %126 = math.exp %125 : vector<8x128xf32>
    %cst_38 = arith.constant 1.000000e+00 : f32
    %127 = vector.broadcast %cst_38 : f32 to vector<8x128xf32>
    %128 = arith.addf %127, %126 : vector<8x128xf32>
    %129 = tpu.reciprocal %128 : vector<8x128xf32> -> vector<8x128xf32>
    %130 = arith.mulf %74, %129 : vector<8x128xf32>
    %131 = arith.truncf %130 : vector<8x128xf32> to vector<8x128xbf16>
    %132 = tpu.concatenate %98, %131 in 1 : vector<8x128xbf16>, vector<8x128xbf16> -> vector<8x256xbf16>
    %c0_39 = arith.constant 0 : index
    %c0_40 = arith.constant 0 : index
    %133 = vector.load %arg9[%c0_39, %c0_40] : memref<256x128xbf16, #tpu.memory_space<vmem>>, vector<256x128xbf16>
    %cst_41 = arith.constant dense<0.000000e+00> : vector<8x128xf32>
    %134 = tpu.matmul %132, %133, %cst_41 {dimension_numbers = #tpu.dot_dimension_numbers<[1], [0], [0], [1], [0, 0, 1, 1], [], []>} : vector<8x256xbf16>, vector<256x128xbf16>, vector<8x128xf32> -> vector<8x128xf32>
    %135 = arith.truncf %134 : vector<8x128xf32> to vector<8x128xbf16>
    %c0_42 = arith.constant 0 : index
    %c0_43 = arith.constant 0 : index
    %136 = vector.load %arg10[%c0_42, %c0_43] : memref<128x256xbf16, #tpu.memory_space<vmem>>, vector<128x256xbf16>
    %cst_44 = arith.constant dense<0.000000e+00> : vector<8x256xf32>
    %137 = tpu.matmul %135, %136, %cst_44 {dimension_numbers = #tpu.dot_dimension_numbers<[1], [0], [0], [1], [0, 0, 1, 1], [], []>} : vector<8x128xbf16>, vector<128x256xbf16>, vector<8x256xf32> -> vector<8x256xf32>
    %c0_45 = arith.constant 0 : index
    %c0_46 = arith.constant 0 : index
    %138 = vector.load %arg11[%c0_45, %c0_46] : memref<8x256xf32, #tpu.memory_space<vmem>>, vector<8x256xf32>
    %139 = arith.addf %137, %138 : vector<8x256xf32>
    %cst_47 = arith.constant 0.000000e+00 : f32
    %140 = vector.broadcast %cst_47 : f32 to vector<8x256xf32>
    %141 = arith.maximumf %139, %140 : vector<8x256xf32>
    %c0_48 = arith.constant 0 : index
    %c0_49 = arith.constant 0 : index
    %142 = vector.load %arg12[%c0_48, %c0_49] : memref<8x256xf32, #tpu.memory_space<vmem>>, vector<8x256xf32>
    %cst_50 = arith.constant 0.000000e+00 : f32
    %143 = vector.broadcast %cst_50 : f32 to vector<8x256xf32>
    %c1_i32_51 = arith.constant 1 : i32
    %144 = tpu.dynamic_rotate %141 by %c1_i32_51 dim 1 : vector<8x256xf32>, i32 -> vector<8x256xf32>
    %145 = vector.extract_strided_slice %142 {offsets = [0, 0], sizes = [1, 256], strides = [1, 1]} : vector<8x256xf32> to vector<1x256xf32>
    %146 = vector.broadcast %145 : vector<1x256xf32> to vector<8x256xf32>
    %147 = arith.mulf %144, %146 : vector<8x256xf32>
    %148 = arith.addf %143, %147 : vector<8x256xf32>
    %149 = vector.extract_strided_slice %142 {offsets = [1, 0], sizes = [1, 256], strides = [1, 1]} : vector<8x256xf32> to vector<1x256xf32>
    %150 = vector.broadcast %149 : vector<1x256xf32> to vector<8x256xf32>
    %151 = arith.mulf %141, %150 : vector<8x256xf32>
    %152 = arith.addf %148, %151 : vector<8x256xf32>
    %c255_i32 = arith.constant 255 : i32
    %153 = tpu.dynamic_rotate %141 by %c255_i32 dim 1 : vector<8x256xf32>, i32 -> vector<8x256xf32>
    %154 = vector.extract_strided_slice %142 {offsets = [2, 0], sizes = [1, 256], strides = [1, 1]} : vector<8x256xf32> to vector<1x256xf32>
    %155 = vector.broadcast %154 : vector<1x256xf32> to vector<8x256xf32>
    %156 = arith.mulf %153, %155 : vector<8x256xf32>
    %157 = arith.addf %152, %156 : vector<8x256xf32>
    %cst_52 = arith.constant 0.000000e+00 : f32
    %158 = vector.broadcast %cst_52 : f32 to vector<8x256xf32>
    %159 = arith.subf %158, %157 : vector<8x256xf32>
    %160 = math.exp %159 : vector<8x256xf32>
    %cst_53 = arith.constant 1.000000e+00 : f32
    %161 = vector.broadcast %cst_53 : f32 to vector<8x256xf32>
    %162 = arith.addf %161, %160 : vector<8x256xf32>
    %163 = tpu.reciprocal %162 : vector<8x256xf32> -> vector<8x256xf32>
    %164 = arith.mulf %141, %163 : vector<8x256xf32>
    %165 = arith.truncf %164 : vector<8x256xf32> to vector<8x256xbf16>
    %cst_54 = arith.constant 0.000000e+00 : f32
    %166 = vector.broadcast %cst_54 : f32 to vector<8x256xf32>
    %c2_i32_55 = arith.constant 2 : i32
    %167 = tpu.dynamic_rotate %141 by %c2_i32_55 dim 1 : vector<8x256xf32>, i32 -> vector<8x256xf32>
    %168 = vector.extract_strided_slice %142 {offsets = [3, 0], sizes = [1, 256], strides = [1, 1]} : vector<8x256xf32> to vector<1x256xf32>
    %169 = vector.broadcast %168 : vector<1x256xf32> to vector<8x256xf32>
    %170 = arith.mulf %167, %169 : vector<8x256xf32>
    %171 = arith.addf %166, %170 : vector<8x256xf32>
    %c1_i32_56 = arith.constant 1 : i32
    %172 = tpu.dynamic_rotate %141 by %c1_i32_56 dim 1 : vector<8x256xf32>, i32 -> vector<8x256xf32>
    %173 = vector.extract_strided_slice %142 {offsets = [4, 0], sizes = [1, 256], strides = [1, 1]} : vector<8x256xf32> to vector<1x256xf32>
    %174 = vector.broadcast %173 : vector<1x256xf32> to vector<8x256xf32>
    %175 = arith.mulf %172, %174 : vector<8x256xf32>
    %176 = arith.addf %171, %175 : vector<8x256xf32>
    %177 = vector.extract_strided_slice %142 {offsets = [5, 0], sizes = [1, 256], strides = [1, 1]} : vector<8x256xf32> to vector<1x256xf32>
    %178 = vector.broadcast %177 : vector<1x256xf32> to vector<8x256xf32>
    %179 = arith.mulf %141, %178 : vector<8x256xf32>
    %180 = arith.addf %176, %179 : vector<8x256xf32>
    %c255_i32_57 = arith.constant 255 : i32
    %181 = tpu.dynamic_rotate %141 by %c255_i32_57 dim 1 : vector<8x256xf32>, i32 -> vector<8x256xf32>
    %182 = vector.extract_strided_slice %142 {offsets = [6, 0], sizes = [1, 256], strides = [1, 1]} : vector<8x256xf32> to vector<1x256xf32>
    %183 = vector.broadcast %182 : vector<1x256xf32> to vector<8x256xf32>
    %184 = arith.mulf %181, %183 : vector<8x256xf32>
    %185 = arith.addf %180, %184 : vector<8x256xf32>
    %c254_i32 = arith.constant 254 : i32
    %186 = tpu.dynamic_rotate %141 by %c254_i32 dim 1 : vector<8x256xf32>, i32 -> vector<8x256xf32>
    %187 = vector.extract_strided_slice %142 {offsets = [7, 0], sizes = [1, 256], strides = [1, 1]} : vector<8x256xf32> to vector<1x256xf32>
    %188 = vector.broadcast %187 : vector<1x256xf32> to vector<8x256xf32>
    %189 = arith.mulf %186, %188 : vector<8x256xf32>
    %190 = arith.addf %185, %189 : vector<8x256xf32>
    %cst_58 = arith.constant 0.000000e+00 : f32
    %191 = vector.broadcast %cst_58 : f32 to vector<8x256xf32>
    %192 = arith.subf %191, %190 : vector<8x256xf32>
    %193 = math.exp %192 : vector<8x256xf32>
    %cst_59 = arith.constant 1.000000e+00 : f32
    %194 = vector.broadcast %cst_59 : f32 to vector<8x256xf32>
    %195 = arith.addf %194, %193 : vector<8x256xf32>
    %196 = tpu.reciprocal %195 : vector<8x256xf32> -> vector<8x256xf32>
    %197 = arith.mulf %141, %196 : vector<8x256xf32>
    %198 = arith.truncf %197 : vector<8x256xf32> to vector<8x256xbf16>
    %199 = tpu.concatenate %165, %198 in 1 : vector<8x256xbf16>, vector<8x256xbf16> -> vector<8x512xbf16>
    %c0_60 = arith.constant 0 : index
    %c0_61 = arith.constant 0 : index
    %200 = vector.load %arg13[%c0_60, %c0_61] : memref<512x256xbf16, #tpu.memory_space<vmem>>, vector<512x256xbf16>
    %cst_62 = arith.constant dense<0.000000e+00> : vector<8x256xf32>
    %201 = tpu.matmul %199, %200, %cst_62 {dimension_numbers = #tpu.dot_dimension_numbers<[1], [0], [0], [1], [0, 0, 1, 1], [], []>} : vector<8x512xbf16>, vector<512x256xbf16>, vector<8x256xf32> -> vector<8x256xf32>
    %202 = arith.truncf %201 : vector<8x256xf32> to vector<8x256xbf16>
    %c0_63 = arith.constant 0 : index
    %c0_64 = arith.constant 0 : index
    %203 = vector.load %arg14[%c0_63, %c0_64] : memref<256x128xbf16, #tpu.memory_space<vmem>>, vector<256x128xbf16>
    %cst_65 = arith.constant dense<0.000000e+00> : vector<8x128xf32>
    %204 = tpu.matmul %202, %203, %cst_65 {dimension_numbers = #tpu.dot_dimension_numbers<[1], [0], [0], [1], [0, 0, 1, 1], [], []>} : vector<8x256xbf16>, vector<256x128xbf16>, vector<8x128xf32> -> vector<8x128xf32>
    %c0_66 = arith.constant 0 : index
    %c0_67 = arith.constant 0 : index
    %205 = vector.load %arg15[%c0_66, %c0_67] : memref<8x128xf32, #tpu.memory_space<vmem>>, vector<8x128xf32>
    %206 = arith.addf %204, %205 : vector<8x128xf32>
    %cst_68 = arith.constant 0.000000e+00 : f32
    %207 = vector.broadcast %cst_68 : f32 to vector<8x128xf32>
    %208 = arith.maximumf %206, %207 : vector<8x128xf32>
    %209 = arith.truncf %208 : vector<8x128xf32> to vector<8x128xbf16>
    %c0_69 = arith.constant 0 : index
    %c0_70 = arith.constant 0 : index
    %210 = vector.load %arg16[%c0_69, %c0_70] : memref<128x128xbf16, #tpu.memory_space<vmem>>, vector<128x128xbf16>
    %cst_71 = arith.constant dense<0.000000e+00> : vector<8x128xf32>
    %211 = tpu.matmul %209, %210, %cst_71 {dimension_numbers = #tpu.dot_dimension_numbers<[1], [0], [0], [1], [0, 0, 1, 1], [], []>} : vector<8x128xbf16>, vector<128x128xbf16>, vector<8x128xf32> -> vector<8x128xf32>
    %c0_72 = arith.constant 0 : index
    %c0_73 = arith.constant 0 : index
    %212 = vector.load %arg17[%c0_72, %c0_73] : memref<8x128xf32, #tpu.memory_space<vmem>>, vector<8x128xf32>
    %213 = arith.addf %211, %212 : vector<8x128xf32>
    %cst_74 = arith.constant 0.000000e+00 : f32
    %214 = vector.broadcast %cst_74 : f32 to vector<8x128xf32>
    %215 = arith.maximumf %213, %214 : vector<8x128xf32>
    %216 = arith.truncf %215 : vector<8x128xf32> to vector<8x128xbf16>
    %c0_75 = arith.constant 0 : index
    %c0_76 = arith.constant 0 : index
    %217 = vector.load %arg18[%c0_75, %c0_76] : memref<128x128xbf16, #tpu.memory_space<vmem>>, vector<128x128xbf16>
    %cst_77 = arith.constant dense<0.000000e+00> : vector<8x128xf32>
    %218 = tpu.matmul %216, %217, %cst_77 {dimension_numbers = #tpu.dot_dimension_numbers<[1], [0], [0], [1], [0, 0, 1, 1], [], []>} : vector<8x128xbf16>, vector<128x128xbf16>, vector<8x128xf32> -> vector<8x128xf32>
    %c0_78 = arith.constant 0 : index
    %c0_79 = arith.constant 0 : index
    %219 = vector.load %arg19[%c0_78, %c0_79] : memref<8x128xf32, #tpu.memory_space<vmem>>, vector<8x128xf32>
    %220 = arith.addf %218, %219 : vector<8x128xf32>
    %c0_80 = arith.constant 0 : index
    %c0_81 = arith.constant 0 : index
    %221 = vector.load %arg20[%c0_80, %c0_81] : memref<8x128xf32, #tpu.memory_space<vmem>>, vector<8x128xf32>
    tpu.vector_store %arg20[%c0_80, %c0_81], %220 {strides = array<i32>} : memref<8x128xf32, #tpu.memory_space<vmem>>, vector<8x128xf32>,
    return
  }
  func.func @transform_0(%arg0: i32) -> (i32, i32) {
    %c0_i32 = arith.constant 0 : i32
    %c0_i32_0 = arith.constant 0 : i32
    return %arg0, %c0_i32 : i32, i32
  }
  func.func @transform_1(%arg0: i32) -> (i32, i32) {
    %c0_i32 = arith.constant 0 : i32
    %c0_i32_0 = arith.constant 0 : i32
    %c0_i32_1 = arith.constant 0 : i32
    return %c0_i32, %c0_i32_0 : i32, i32
  }
  func.func @transform_2(%arg0: i32) -> (i32, i32) {
    %c0_i32 = arith.constant 0 : i32
    %c0_i32_0 = arith.constant 0 : i32
    %c0_i32_1 = arith.constant 0 : i32
    return %c0_i32, %c0_i32_0 : i32, i32
  }
  func.func @transform_3(%arg0: i32) -> (i32, i32) {
    %c0_i32 = arith.constant 0 : i32
    %c0_i32_0 = arith.constant 0 : i32
    %c0_i32_1 = arith.constant 0 : i32
    return %c0_i32, %c0_i32_0 : i32, i32
  }
  func.func @transform_4(%arg0: i32) -> (i32, i32) {
    %c0_i32 = arith.constant 0 : i32
    %c0_i32_0 = arith.constant 0 : i32
    %c0_i32_1 = arith.constant 0 : i32
    return %c0_i32, %c0_i32_0 : i32, i32
  }
  func.func @transform_5(%arg0: i32) -> (i32, i32) {
    %c0_i32 = arith.constant 0 : i32
    %c0_i32_0 = arith.constant 0 : i32
    %c0_i32_1 = arith.constant 0 : i32
    return %c0_i32, %c0_i32_0 : i32, i32
  }
  func.func @transform_6(%arg0: i32) -> (i32, i32) {
    %c0_i32 = arith.constant 0 : i32
    %c0_i32_0 = arith.constant 0 : i32
    %c0_i32_1 = arith.constant 0 : i32
    return %c0_i32, %c0_i32_0 : i32, i32
  }
  func.func @transform_7(%arg0: i32) -> (i32, i32) {
    %c0_i32 = arith.constant 0 : i32
    %c0_i32_0 = arith.constant 0 : i32
    %c0_i32_1 = arith.constant 0 : i32
    return %c0_i32, %c0_i32_0 : i32, i32
  }
  func.func @transform_8(%arg0: i32) -> (i32, i32) {
    %c0_i32 = arith.constant 0 : i32
    %c0_i32_0 = arith.constant 0 : i32
    %c0_i32_1 = arith.constant 0 : i32
    return %c0_i32, %c0_i32_0 : i32, i32
  }
  func.func @transform_9(%arg0: i32) -> (i32, i32) {
    %c0_i32 = arith.constant 0 : i32
    %c0_i32_0 = arith.constant 0 : i32
    %c0_i32_1 = arith.constant 0 : i32
    return %c0_i32, %c0_i32_0 : i32, i32
  }
  func.func @transform_10(%arg0: i32) -> (i32, i32) {
    %c0_i32 = arith.constant 0 : i32
    %c0_i32_0 = arith.constant 0 : i32
    %c0_i32_1 = arith.constant 0 : i32
    return %c0_i32, %c0_i32_0 : i32, i32
  }
  func.func @transform_11(%arg0: i32) -> (i32, i32) {
    %c0_i32 = arith.constant 0 : i32
    %c0_i32_0 = arith.constant 0 : i32
    %c0_i32_1 = arith.constant 0 : i32
    return %c0_i32, %c0_i32_0 : i32, i32
  }
  func.func @transform_12(%arg0: i32) -> (i32, i32) {
    %c0_i32 = arith.constant 0 : i32
    %c0_i32_0 = arith.constant 0 : i32
    %c0_i32_1 = arith.constant 0 : i32
    return %c0_i32, %c0_i32_0 : i32, i32
  }
  func.func @transform_13(%arg0: i32) -> (i32, i32) {
    %c0_i32 = arith.constant 0 : i32
    %c0_i32_0 = arith.constant 0 : i32
    %c0_i32_1 = arith.constant 0 : i32
    return %c0_i32, %c0_i32_0 : i32, i32
  }
  func.func @transform_14(%arg0: i32) -> (i32, i32) {
    %c0_i32 = arith.constant 0 : i32
    %c0_i32_0 = arith.constant 0 : i32
    %c0_i32_1 = arith.constant 0 : i32
    return %c0_i32, %c0_i32_0 : i32, i32
  }
  func.func @transform_15(%arg0: i32) -> (i32, i32) {
    %c0_i32 = arith.constant 0 : i32
    %c0_i32_0 = arith.constant 0 : i32
    %c0_i32_1 = arith.constant 0 : i32
    return %c0_i32, %c0_i32_0 : i32, i32
  }
  func.func @transform_16(%arg0: i32) -> (i32, i32) {
    %c0_i32 = arith.constant 0 : i32
    %c0_i32_0 = arith.constant 0 : i32
    %c0_i32_1 = arith.constant 0 : i32
    return %c0_i32, %c0_i32_0 : i32, i32
  }
  func.func @transform_17(%arg0: i32) -> (i32, i32) {
    %c0_i32 = arith.constant 0 : i32
    %c0_i32_0 = arith.constant 0 : i32
    %c0_i32_1 = arith.constant 0 : i32
    return %c0_i32, %c0_i32_0 : i32, i32
  }
  func.func @transform_18(%arg0: i32) -> (i32, i32) {
    %c0_i32 = arith.constant 0 : i32
    %c0_i32_0 = arith.constant 0 : i32
    %c0_i32_1 = arith.constant 0 : i32
    return %c0_i32, %c0_i32_0 : i32, i32
  }
  func.func @transform_19(%arg0: i32) -> (i32, i32) {
    %c0_i32 = arith.constant 0 : i32
    %c0_i32_0 = arith.constant 0 : i32
    return %arg0, %c0_i32 : i32, i32
  }
}

</mosaic_0001>

<bundles_post_ra>
// kernel: tpu_custom_call.1
= control target key start
LH: loop header
LB: loop body
LE: loop exit
PB: predicated region body
PF: predicated region fallthrough
CT: control target
= control target key end

     0   :  { %s4926_s0 = inlined_call_operand.vmem [shape: f32[64,16], index: 0, kind: input, shape index: {}]   ;;  %s4927_s1 = inlined_call_operand.hbm [shape: bf16[16,128], index: 1, kind: input, shape index: {}]   ;;  %s4928_s2 = inlined_call_operand.hbm [shape: f32[8,128], index: 2, kind: input, shape index: {}]   ;;  %s4929_s3 = inlined_call_operand.hbm [shape: f32[8,128], index: 3, kind: input, shape index: {}]   ;;  %s4930_s4 = inlined_call_operand.hbm [shape: bf16[256,128], index: 4, kind: input, shape index: {}]   ;;  %s4931_s5 = inlined_call_operand.hbm [shape: bf16[128,128], index: 5, kind: input, shape index: {}]   ;;  %s4932_s6 = inlined_call_operand.hbm [shape: f32[8,128], index: 6, kind: input, shape index: {}]   ;;  %s4933_s7 = inlined_call_operand.hbm [shape: f32[8,128], index: 7, kind: input, shape index: {}]   ;;  %s4934_s8 = inlined_call_operand.hbm [shape: bf16[256,128], index: 8, kind: input, shape index: {}]   ;;  %s4935_s9 = inlined_call_operand.hbm [shape: bf16[128,256], index: 9, kind: input, shape index: {}]   ;;  %s4936_s10 = inlined_call_operand.hbm [shape: f32[8,256], index: 10, kind: input, shape index: {}]   ;;  %s4937_s11 = inlined_call_operand.hbm [shape: f32[8,256], index: 11, kind: input, shape index: {}]   ;;  %s4938_s12 = inlined_call_operand.hbm [shape: bf16[512,256], index: 12, kind: input, shape index: {}]   ;;  %s4939_s13 = inlined_call_operand.vmem [shape: bf16[256,128], index: 13, kind: input, shape index: {}]   ;;  %s4940_s14 = inlined_call_operand.hbm [shape: f32[8,128], index: 14, kind: input, shape index: {}]   ;;  %s4941_s15 = inlined_call_operand.hbm [shape: bf16[128,128], index: 15, kind: input, shape index: {}]   ;;  %s4942_s16 = inlined_call_operand.vmem [shape: f32[8,128], index: 16, kind: input, shape index: {}]   ;;  %s4943_s17 = inlined_call_operand.hbm [shape: bf16[128,128], index: 17, kind: input, shape index: {}]   ;;  %s4944_s18 = inlined_call_operand.vmem [shape: f32[8,128], index: 18, kind: input, shape index: {}]   ;;  %s4945_s19 = inlined_call_operand.hbm [shape: f32[64,128], index: 19, kind: output, shape index: {}]  }
   0x1   :  { %4968 = sst [smem:[#allocation43_spill]] %s4926_s0 }
   0x2   :  { %4969 = sst [smem:[#allocation44_spill]] %s4927_s1 }
   0x3   :  { %4970 = sst [smem:[#allocation45_spill]] %s4928_s2 }
   0x4   :  { %4971 = sst [smem:[#allocation46_spill]] %s4929_s3 }
   0x5   :  { %4972 = sst [smem:[#allocation47_spill]] %s4930_s4 }
   0x6   :  { %4973 = sst [smem:[#allocation48_spill]] %s4932_s6 }
   0x7   :  { %4974 = sst [smem:[#allocation49_spill]] %s4934_s8 }
   0x8   :  { %4975 = sst [smem:[#allocation50_spill]] %s4936_s10 }
   0x9   :  { %4976 = sst [smem:[#allocation51_spill]] %s4942_s16 }
   0xa   :  { %4977 = sst [smem:[#allocation52_spill]] %s4944_s18 }
   0xb   :  { %4978 = sst [smem:[#allocation53_spill]] %s4945_s19 }
   0xc   :  { %24 = vsyncpa [#allocation3], 0 }
   0xd   :  { %25 = vsyncpa [#allocation6], 0 }
   0xe   :  { %26 = vsyncpa [#allocation9], 0 }
   0xf   :  { %27 = vsyncpa [#allocation12], 0 }
  0x10   :  { %28 = vsyncpa [#allocation15], 0 }
  0x11   :  { %29 = vsyncpa [#allocation18], 0 }
  0x12   :  { %30 = vsyncpa [#allocation21], 0 }
  0x13   :  { %31 = vsyncpa [#allocation24], 0 }
  0x14   :  { %32 = vsyncpa [#allocation4], 0 }
  0x15   :  { %34 = vsyncpa [#allocation4 + $0x1], 0  ;;  %s4240_s0 = smov 0   ;;  %s4242_s30 = smov 0  }
  0x16   :  { %s4244_s20 = smov 0   ;;  %s4246_s21 = smov 0  }
  0x17 LB: > { %4979 = sst [smem:[#allocation36_spill]] %s4099_s0  ;;  %s4261_s1 = sadd.s32 4294967295, %s4111_s21   ;;  %s4111_s21 = sphi %s4246_s21, %s5030_s21   ;;  %s4107_s20 = sphi %s4244_s20, %s5032_s20   ;;  %s4103_s30 = sphi %s4242_s30, %s5034_s30   ;;  %s4099_s0 = sphi %s4240_s0, %s5033_s0  }
  0x18   : > { %4980 = sst [smem:[#allocation37_spill]] %s4107_s20  ;;  %s2812_s22 = sadd.s32 4294967294, %s4111_s21  }
  0x19   : > { %4981 = sst [smem:[#allocation38_spill]] %s4111_s21  ;;  %s4265_s2 = sadd.s32 1, %s4111_s21  }
  0x1a   : > { %4982 = sst [smem:[#allocation39_spill]] %s4265_s2  ;;  %s451_s23 = sadd.s32 1, %s4107_s20 }
  0x1b   : > { %s448_s24 = ssub.s32 %s4111_s21, %s4265_s2  ;;  %p461_p0 = scmp.ne.s32.totalorder %s4107_s20, %s4103_s30 }
  0x1c   : > { %p449_p1 = scmp.eq.s32.totalorder %s448_s24, 0  ;;  %p462_p2 = scmp.eq.s32.totalorder %s4261_s1, 7 }
  0x1d   : > { %p467_p3 = scmp.ne.s32.totalorder %s4103_s30, %s4099_s0  ;;  %p468_p4 = scmp.eq.s32.totalorder %s2812_s22, 7 }
  0x1e   : > { %s4276_s25 = scalar_select %p449_p1, %s4107_s20, %s451_s23  }
  0x1f   : > { %p4278_p5 = por %p462_p2, %p461_p0  ;;  %p4282_p6 = por %p468_p4, %p467_p3 }
  0x20   : > { %4983 = sst [smem:[#allocation40_spill]] %s4276_s25  ;;  %p2813_p7 = scmp.ge.s32.totalorder %s4111_s21, 1 }
  0x21   : > { %s4984_s3 = scalar_select %p4278_p5, 1, 0 }
  0x22   : > { %s4986_s26 = scalar_select %p4282_p6, 1, 0 }
  0x23   : > { %4985 = sst [smem:[#allocation41_spill]] %s4984_s3  ;;  %p475_p8 = scmp.lt.s32.totalorder %s4111_s21, 9 }
  0x24   : > { %4987 = sst [smem:[#allocation42_spill]] %s4986_s26  ;;  %p4958_p9 = scmp.eq.s32.totalorder %s4261_s1, 0 }
  0x25   : > { %p4289_p10 = pnand %p2813_p7, %p475_p8  ;;  %s4113_s28 = smov [#allocation5]  }
  0x26   : > { %s501_s29 = sshll.u32 %s4113_s28, 4  ;;  %s4114_s23 = smov [#allocation8]   ;;  %s502_s29 = int_to_ptr.vmem [resolvable:$true] %s501_s29 }
  0x27   : > { %s4988_s27 = scalar_select %p4289_p10, 1, 0 }
  0x28   : > { %p3233_p11 = pneg %p4289_p10  ;;  %s522_s24 = sshll.u32 %s4114_s23, 4  ;;  %s4301_s24 = int_to_ptr.vmem [resolvable:$true] %s522_s24 }
  0x29   : > { %s4115_s25 = smov [#allocation11]   ;;  %s4990_s0 = sld [smem:[#allocation45_spill]] }
  0x2a   : > { %p4297_p12 = pnand %p4958_p9, %p3233_p11  ;;  %s4303_s20 = sshll.u32 %s4115_s25, 4  ;;  %s550_s20 = int_to_ptr.vmem [resolvable:$true] %s4303_s20 }
  0x2c   : > { %p4313_p0 = pneg %p4297_p12 }
  0x2f   : > { %s4991_s19 = smov %s4990_s0  ;;  %s3597_s28 = scalar_lea.hbm %s4990_s0, 128 }
  0x30   : > { %p3598_p13 = scmp.ne.s32.totalorder %s4991_s19, %s3597_s28  ;;  %p3604_p3 = scmp.lt.u32.totalorder %s3597_s28, %s4991_s19 }
  0x32   : > { %p3600_p1 = pnand %p4313_p0, %p3598_p13 }
  0x34   : > { %p3601_p2 = pneg %p3600_p1 }
  0x36   : > { %p3606_p4 = pnand %p3604_p3, %p3601_p2 }
  0x38   : > { %3609 = shalt.err (!%p3606_p4)
}
  0x39   : > { %s3610_s0 = scalar_lea.vmem %s502_s29, 128  ;;  %p3618_p9 = scmp.lt.s32.totalorder %s502_s29, %s502_s29 }
  0x3a   : > { %p3611_p7 = scmp.ne.s32.totalorder %s502_s29, %s3610_s0  ;;  %p3619_p6 = scmp.lt.s32.totalorder %s3610_s0, %s3610_s0 }
  0x3c   : > { %p3613_p8 = pnand %p3611_p7, %p4313_p0  ;;  %p3620_p5 = por %p3619_p6, %p3618_p9 }
  0x3e   : > { %p3614_p11 = pneg %p3613_p8 }
  0x40   : > { %p3621_p10 = pnand %p3620_p5, %p3614_p11 }
  0x42   : > { %3624 = shalt.err (!%p3621_p10)
}
  0x43   : > { %3239 = dma.hbm_to_vmem [thread:$0]  (!%p4297_p12), %s4991_s19, 128, %s502_s29, [#allocation6]  }
  0x44   : > { %s4993_s4 = sld [smem:[#allocation47_spill]] }
  0x4a   : > { %s3625_s28 = scalar_lea.hbm %s4993_s4, 2048 }
  0x4b   : > { %p3626_p13 = scmp.ne.s32.totalorder %s4993_s4, %s3625_s28  ;;  %p3632_p5 = scmp.lt.u32.totalorder %s3625_s28, %s4993_s4 }
  0x4d   : > { %p3628_p1 = pnand %p3626_p13, %p4313_p0 }
  0x4f   : > { %p3629_p6 = pneg %p3628_p1 }
  0x51   : > { %p3634_p9 = pnand %p3632_p5, %p3629_p6 }
  0x53   : > { %3637 = shalt.err (!%p3634_p9)
}
  0x54   : > { %s3638_s29 = scalar_lea.vmem %s4301_s24, 2048  ;;  %p3646_p4 = scmp.lt.s32.totalorder %s4301_s24, %s4301_s24 }
  0x55   : > { %p3639_p10 = scmp.ne.s32.totalorder %s4301_s24, %s3638_s29  ;;  %p3647_p7 = scmp.lt.s32.totalorder %s3638_s29, %s3638_s29 }
  0x57   : > { %p3641_p2 = pnand %p3639_p10, %p4313_p0  ;;  %p3648_p8 = por %p3647_p7, %p3646_p4 }
  0x59   : > { %p3642_p3 = pneg %p3641_p2 }
  0x5b   : > { %p3649_p11 = pnand %p3648_p8, %p3642_p3 }
  0x5d   : > { %3652 = shalt.err (!%p3649_p11)
}
  0x5e   : > { %s4962_s21 = smov 64   ;;  %s4964_s16 = smov 4  }
  0x5f   : > { %3245 = dma.hbm_to_vmem [thread:$0]  (!%p4297_p12), %s4993_s4, 2048, %s4301_s24, [#allocation9], %s4962_s21, %s4962_s21, %s4964_s16  }
  0x60   : > { %s4994_s6 = sld [smem:[#allocation48_spill]] }
  0x66   : > { %s3653_s23 = scalar_lea.hbm %s4994_s6, 128 }
  0x67   : > { %p3654_p13 = scmp.ne.s32.totalorder %s4994_s6, %s3653_s23  ;;  %p3660_p5 = scmp.lt.u32.totalorder %s3653_s23, %s4994_s6 }
  0x69   : > { %p3656_p1 = pnand %p3654_p13, %p4313_p0 }
  0x6b   : > { %p3657_p6 = pneg %p3656_p1 }
  0x6d   : > { %p3662_p9 = pnand %p3660_p5, %p3657_p6 }
  0x6f   : > { %3665 = shalt.err (!%p3662_p9)
}
  0x70   : > { %s3666_s2 = scalar_lea.vmem %s550_s20, 128  ;;  %p3674_p4 = scmp.lt.s32.totalorder %s550_s20, %s550_s20 }
  0x71   : > { %p3667_p10 = scmp.ne.s32.totalorder %s550_s20, %s3666_s2  ;;  %p3675_p7 = scmp.lt.s32.totalorder %s3666_s2, %s3666_s2 }
  0x73   : > { %p3669_p2 = pnand %p3667_p10, %p4313_p0  ;;  %p3676_p8 = por %p3675_p7, %p3674_p4 }
  0x75   : > { %p3670_p3 = pneg %p3669_p2 }
  0x77   : > { %p3677_p11 = pnand %p3676_p8, %p3670_p3 }
  0x79   : > { %3680 = shalt.err (!%p3677_p11)
}
  0x7a   : > { %3251 = dma.hbm_to_vmem [thread:$0]  (!%p4297_p12), %s4994_s6, 128, %s550_s20, [#allocation12]  }
  0x7b   : > { %s4118_s19 = smov [#allocation14]   ;;  %s4119_s28 = smov [#allocation17]  }
  0x7c   : > { %s570_s26 = sshll.u32 %s4118_s19, 4  ;;  %s597_s23 = sshll.u32 %s4119_s28, 4  ;;  %s571_s26 = int_to_ptr.vmem [resolvable:$true] %s570_s26  ;;  %s598_s23 = int_to_ptr.vmem [resolvable:$true] %s597_s23 }
  0x7d   : > { %s4995_s8 = sld [smem:[#allocation49_spill]] }
  0x83   : > { %s3681_s29 = scalar_lea.hbm %s4995_s8, 2048 }
  0x84   : > { %p3682_p13 = scmp.ne.s32.totalorder %s4995_s8, %s3681_s29  ;;  %p3688_p5 = scmp.lt.u32.totalorder %s3681_s29, %s4995_s8 }
  0x86   : > { %p3684_p1 = pnand %p3682_p13, %p4313_p0 }
  0x88   : > { %p3685_p6 = pneg %p3684_p1 }
  0x8a   : > { %p3690_p9 = pnand %p3688_p5, %p3685_p6 }
  0x8c   : > { %3693 = shalt.err (!%p3690_p9)
}
  0x8d   : > { %s3694_s20 = scalar_lea.vmem %s571_s26, 2048  ;;  %p3702_p4 = scmp.lt.s32.totalorder %s571_s26, %s571_s26 }
  0x8e   : > { %p3695_p10 = scmp.ne.s32.totalorder %s571_s26, %s3694_s20  ;;  %p3703_p7 = scmp.lt.s32.totalorder %s3694_s20, %s3694_s20 }
  0x90   : > { %p3697_p2 = pnand %p3695_p10, %p4313_p0  ;;  %p3704_p8 = por %p3703_p7, %p3702_p4 }
  0x92   : > { %p3698_p3 = pneg %p3697_p2 }
  0x94   : > { %p3705_p11 = pnand %p3704_p8, %p3698_p3 }
  0x96   : > { %3708 = shalt.err (!%p3705_p11)
}
  0x97   : > { %s4996_s21 = smov 4   ;;  %s4997_s3 = smov 64  }
  0x98   : > { %3257 = dma.hbm_to_vmem [thread:$0]  (!%p4297_p12), %s4995_s8, 2048, %s571_s26, [#allocation15], %s4997_s3, %s4997_s3, %s4996_s21  }
  0x99   : > { %s4998_s10 = sld [smem:[#allocation50_spill]] }
  0x9f   : > { %s3709_s0 = scalar_lea.hbm %s4998_s10, 256 }
  0xa0   : > { %p3710_p13 = scmp.ne.s32.totalorder %s4998_s10, %s3709_s0  ;;  %p3716_p5 = scmp.lt.u32.totalorder %s3709_s0, %s4998_s10 }
  0xa2   : > { %p3712_p1 = pnand %p3710_p13, %p4313_p0 }
  0xa4   : > { %p3713_p6 = pneg %p3712_p1 }
  0xa6   : > { %p3718_p9 = pnand %p3716_p5, %p3713_p6 }
  0xa8   : > { %3721 = shalt.err (!%p3718_p9)
}
  0xa9   : > { %s3722_s16 = scalar_lea.vmem %s598_s23, 256  ;;  %p3730_p4 = scmp.lt.s32.totalorder %s598_s23, %s598_s23 }
  0xaa   : > { %p3723_p10 = scmp.ne.s32.totalorder %s598_s23, %s3722_s16  ;;  %p3731_p7 = scmp.lt.s32.totalorder %s3722_s16, %s3722_s16 }
  0xac   : > { %p3725_p2 = pnand %p3723_p10, %p4313_p0  ;;  %p3732_p8 = por %p3731_p7, %p3730_p4 }
  0xae   : > { %p3726_p3 = pneg %p3725_p2 }
  0xb0   : > { %p3733_p11 = pnand %p3732_p8, %p3726_p3 }
  0xb2   : > { %3736 = shalt.err (!%p3733_p11)
}
  0xb3   : > { %3263 = dma.hbm_to_vmem [thread:$0]  (!%p4297_p12), %s4998_s10, 256, %s598_s23, [#allocation18]  }
  0xb4   : > { %s4120_s28 = smov [#allocation20]   ;;  %s4121_s0 = smov [#allocation23]  }
  0xb5   : > { %s618_s25 = sshll.u32 %s4120_s28, 4  ;;  %s645_s29 = sshll.u32 %s4121_s0, 4  ;;  %s619_s25 = int_to_ptr.vmem [resolvable:$true] %s618_s25  ;;  %s646_s29 = int_to_ptr.vmem [resolvable:$true] %s645_s29 }
  0xb6   : > { %s3737_s20 = scalar_lea.hbm %s4938_s12, 8192 }
  0xb7   : > { %p3738_p13 = scmp.ne.s32.totalorder %s4938_s12, %s3737_s20  ;;  %p3744_p5 = scmp.lt.u32.totalorder %s3737_s20, %s4938_s12 }
  0xb9   : > { %p3740_p1 = pnand %p3738_p13, %p4313_p0 }
  0xbb   : > { %p3741_p6 = pneg %p3740_p1 }
  0xbd   : > { %p3746_p9 = pnand %p3744_p5, %p3741_p6 }
  0xbf   : > { %3749 = shalt.err (!%p3746_p9)
}
  0xc0   : > { %s3750_s23 = scalar_lea.vmem %s619_s25, 8192  ;;  %p3758_p4 = scmp.lt.s32.totalorder %s619_s25, %s619_s25 }
  0xc1   : > { %p3751_p10 = scmp.ne.s32.totalorder %s619_s25, %s3750_s23  ;;  %p3759_p7 = scmp.lt.s32.totalorder %s3750_s23, %s3750_s23 }
  0xc3   : > { %p3753_p2 = pnand %p3751_p10, %p4313_p0  ;;  %p3760_p8 = por %p3759_p7, %p3758_p4 }
  0xc5   : > { %p3754_p3 = pneg %p3753_p2 }
  0xc7   : > { %p3761_p11 = pnand %p3760_p8, %p3754_p3 }
  0xc9   : > { %3764 = shalt.err (!%p3761_p11)
}
  0xca   : > { %s4966_s4 = smov 128   ;;  %s4967_s19 = smov 8  }
  0xcb   : > { %3269 = dma.hbm_to_vmem [thread:$0]  (!%p4297_p12), %s4938_s12, 8192, %s619_s25, [#allocation21], %s4966_s4, %s4966_s4, %s4967_s19  }
  0xcc   : > { %s3765_s24 = scalar_lea.hbm %s4941_s15, 1024 }
  0xcd   : > { %p3766_p13 = scmp.ne.s32.totalorder %s4941_s15, %s3765_s24  ;;  %p3772_p5 = scmp.lt.u32.totalorder %s3765_s24, %s4941_s15 }
  0xcf   : > { %p3768_p1 = pnand %p3766_p13, %p4313_p0 }
  0xd1   : > { %p3769_p6 = pneg %p3768_p1 }
  0xd3   : > { %p3774_p9 = pnand %p3772_p5, %p3769_p6 }
  0xd5   : > { %3777 = shalt.err (!%p3774_p9)
}
  0xd6   : > { %s3778_s6 = scalar_lea.vmem %s646_s29, 1024  ;;  %p3786_p4 = scmp.lt.s32.totalorder %s646_s29, %s646_s29 }
  0xd7   : > { %p3779_p10 = scmp.ne.s32.totalorder %s646_s29, %s3778_s6  ;;  %p3787_p7 = scmp.lt.s32.totalorder %s3778_s6, %s3778_s6 }
  0xd9   : > { %p3781_p2 = pnand %p3779_p10, %p4313_p0  ;;  %p3788_p8 = por %p3787_p7, %p3786_p4 }
  0xdb   : > { %p3782_p3 = pneg %p3781_p2 }
  0xdd   : > { %p3789_p11 = pnand %p3788_p8, %p3782_p3 }
  0xdf   : > { %3792 = shalt.err (!%p3789_p11)
}
  0xe0   : > { %3275 = dma.hbm_to_vmem [thread:$0]  (!%p4297_p12), %s4941_s15, 1024, %s646_s29, [#allocation24], %s4997_s3, %s4997_s3, %s4996_s21  }
  0xe1   : > { %s4124_s0 = smov [#allocation2]   ;;  %s4125_s24 = smov [#allocation7]  }
  0xe2   : > { %s487_s2 = sshll.u32 %s4124_s0, 4  ;;  %s512_s20 = sshll.u32 %s4125_s24, 4  ;;  %s488_s2 = int_to_ptr.vmem [resolvable:$true] %s487_s2  ;;  %s513_s20 = int_to_ptr.vmem [resolvable:$true] %s512_s20 }
  0xe3   : > { %s4999_s23 = sld [smem:[#allocation44_spill]] }
  0xe9   : > { %s3793_s6 = scalar_lea.hbm %s4999_s23, 128 }
  0xea   : > { %p3794_p13 = scmp.ne.s32.totalorder %s4999_s23, %s3793_s6  ;;  %p3800_p5 = scmp.lt.u32.totalorder %s3793_s6, %s4999_s23 }
  0xec   : > { %p3796_p1 = pnand %p3794_p13, %p4313_p0 }
  0xee   : > { %p3797_p6 = pneg %p3796_p1 }
  0xf0   : > { %p3802_p9 = pnand %p3800_p5, %p3797_p6 }
  0xf2   : > { %3805 = shalt.err (!%p3802_p9)
}
  0xf3   : > { %s3806_s29 = scalar_lea.vmem %s488_s2, 128  ;;  %p3814_p4 = scmp.lt.s32.totalorder %s488_s2, %s488_s2 }
  0xf4   : > { %p3807_p10 = scmp.ne.s32.totalorder %s488_s2, %s3806_s29  ;;  %p3815_p7 = scmp.lt.s32.totalorder %s3806_s29, %s3806_s29 }
  0xf6   : > { %p3809_p2 = pnand %p3807_p10, %p4313_p0  ;;  %p3816_p8 = por %p3815_p7, %p3814_p4 }
  0xf8   : > { %p3810_p3 = pneg %p3809_p2 }
  0xfa   : > { %p3817_p11 = pnand %p3816_p8, %p3810_p3 }
  0xfc   : > { %3820 = shalt.err (!%p3817_p11)
}
  0xfd   : > { %3236 = dma.hbm_to_vmem [thread:$0]  (!%p4297_p12), %s4999_s23, 128, %s488_s2, [#allocation3], %s4997_s3, %s4997_s3, %s4996_s21  }
  0xfe   : > { %s5000_s0 = sld [smem:[#allocation46_spill]] }
 0x104   : > { %s5001_s24 = smov %s5000_s0  ;;  %s3821_s16 = scalar_lea.hbm %s5000_s0, 128 }
 0x105   : > { %p3822_p13 = scmp.ne.s32.totalorder %s5001_s24, %s3821_s16  ;;  %p3828_p5 = scmp.lt.u32.totalorder %s3821_s16, %s5001_s24 }
 0x107   : > { %p3824_p1 = pnand %p3822_p13, %p4313_p0 }
 0x109   : > { %p3825_p6 = pneg %p3824_p1 }
 0x10b   : > { %p3830_p9 = pnand %p3828_p5, %p3825_p6 }
 0x10d   : > { %3833 = shalt.err (!%p3830_p9)
}
 0x10e   : > { %s3834_s8 = scalar_lea.vmem %s513_s20, 128  ;;  %p3842_p4 = scmp.lt.s32.totalorder %s513_s20, %s513_s20 }
 0x10f   : > { %p3835_p10 = scmp.ne.s32.totalorder %s513_s20, %s3834_s8  ;;  %p3843_p7 = scmp.lt.s32.totalorder %s3834_s8, %s3834_s8 }
 0x111   : > { %p3837_p2 = pnand %p3835_p10, %p4313_p0  ;;  %p3844_p8 = por %p3843_p7, %p3842_p4 }
 0x113   : > { %p3838_p3 = pneg %p3837_p2 }
 0x115   : > { %p3845_p11 = pnand %p3844_p8, %p3838_p3 }
 0x117   : > { %3848 = shalt.err (!%p3845_p11)
}
 0x118   : > { %3242 = dma.hbm_to_vmem [thread:$0]  (!%p4297_p12), %s5001_s24, 128, %s513_s20, [#allocation6]  }
 0x119   : > { %s4126_s19 = smov [#allocation10]   ;;  %s4127_s0 = smov [#allocation13]  }
 0x11a   : > { %s535_s28 = sshll.u32 %s4126_s19, 4  ;;  %s560_s16 = sshll.u32 %s4127_s0, 4  ;;  %s536_s28 = int_to_ptr.vmem [resolvable:$true] %s535_s28  ;;  %s561_s16 = int_to_ptr.vmem [resolvable:$true] %s560_s16 }
 0x11b   : > { %s3849_s25 = scalar_lea.hbm %s4931_s5, 1024 }
 0x11c   : > { %p3850_p13 = scmp.ne.s32.totalorder %s4931_s5, %s3849_s25  ;;  %p3856_p5 = scmp.lt.u32.totalorder %s3849_s25, %s4931_s5 }
 0x11e   : > { %p3852_p1 = pnand %p3850_p13, %p4313_p0 }
 0x120   : > { %p3853_p6 = pneg %p3852_p1 }
 0x122   : > { %p3858_p9 = pnand %p3856_p5, %p3853_p6 }
 0x124   : > { %3861 = shalt.err (!%p3858_p9)
}
 0x125   : > { %s3862_s20 = scalar_lea.vmem %s536_s28, 1024  ;;  %p3870_p4 = scmp.lt.s32.totalorder %s536_s28, %s536_s28 }
 0x126   : > { %p3863_p10 = scmp.ne.s32.totalorder %s536_s28, %s3862_s20  ;;  %p3871_p7 = scmp.lt.s32.totalorder %s3862_s20, %s3862_s20 }
 0x128   : > { %p3865_p2 = pnand %p3863_p10, %p4313_p0  ;;  %p3872_p8 = por %p3871_p7, %p3870_p4 }
 0x12a   : > { %p3866_p3 = pneg %p3865_p2 }
 0x12c   : > { %p3873_p11 = pnand %p3872_p8, %p3866_p3 }
 0x12e   : > { %3876 = shalt.err (!%p3873_p11)
}
 0x12f   : > { %3248 = dma.hbm_to_vmem [thread:$0]  (!%p4297_p12), %s4931_s5, 1024, %s536_s28, [#allocation9], %s4997_s3, %s4997_s3, %s4996_s21  }
 0x130   : > { %s3877_s26 = scalar_lea.hbm %s4933_s7, 128 }
 0x131   : > { %p3878_p13 = scmp.ne.s32.totalorder %s4933_s7, %s3877_s26  ;;  %p3884_p5 = scmp.lt.u32.totalorder %s3877_s26, %s4933_s7 }
 0x133   : > { %p3880_p1 = pnand %p3878_p13, %p4313_p0 }
 0x135   : > { %p3881_p6 = pneg %p3880_p1 }
 0x137   : > { %p3886_p9 = pnand %p3884_p5, %p3881_p6 }
 0x139   : > { %3889 = shalt.err (!%p3886_p9)
}
 0x13a   : > { %s3890_s2 = scalar_lea.vmem %s561_s16, 128  ;;  %p3898_p4 = scmp.lt.s32.totalorder %s561_s16, %s561_s16 }
 0x13b   : > { %p3891_p10 = scmp.ne.s32.totalorder %s561_s16, %s3890_s2  ;;  %p3899_p7 = scmp.lt.s32.totalorder %s3890_s2, %s3890_s2 }
 0x13d   : > { %p3893_p2 = pnand %p3891_p10, %p4313_p0  ;;  %p3900_p8 = por %p3899_p7, %p3898_p4 }
 0x13f   : > { %p3894_p3 = pneg %p3893_p2 }
 0x141   : > { %p3901_p11 = pnand %p3900_p8, %p3894_p3 }
 0x143   : > { %3904 = shalt.err (!%p3901_p11)
}
 0x144   : > { %3254 = dma.hbm_to_vmem [thread:$0]  (!%p4297_p12), %s4933_s7, 128, %s561_s16, [#allocation12]  }
 0x145   : > { %s4128_s10 = smov [#allocation16]   ;;  %s4129_s19 = smov [#allocation19]  }
 0x146   : > { %s583_s4 = sshll.u32 %s4128_s10, 4  ;;  %s608_s0 = sshll.u32 %s4129_s19, 4  ;;  %s584_s4 = int_to_ptr.vmem [resolvable:$true] %s583_s4  ;;  %s609_s0 = int_to_ptr.vmem [resolvable:$true] %s608_s0 }
 0x147   : > { %s3905_s25 = scalar_lea.hbm %s4935_s9, 2048 }
 0x148   : > { %p3906_p13 = scmp.ne.s32.totalorder %s4935_s9, %s3905_s25  ;;  %p3912_p5 = scmp.lt.u32.totalorder %s3905_s25, %s4935_s9 }
 0x14a   : > { %p3908_p1 = pnand %p3906_p13, %p4313_p0 }
 0x14c   : > { %p3909_p6 = pneg %p3908_p1 }
 0x14e   : > { %p3914_p9 = pnand %p3912_p5, %p3909_p6 }
 0x150   : > { %3917 = shalt.err (!%p3914_p9)
}
 0x151   : > { %s3918_s16 = scalar_lea.vmem %s584_s4, 2048  ;;  %p3926_p4 = scmp.lt.s32.totalorder %s584_s4, %s584_s4 }
 0x152   : > { %p3919_p10 = scmp.ne.s32.totalorder %s584_s4, %s3918_s16  ;;  %p3927_p7 = scmp.lt.s32.totalorder %s3918_s16, %s3918_s16 }
 0x154   : > { %p3921_p2 = pnand %p3919_p10, %p4313_p0  ;;  %p3928_p8 = por %p3927_p7, %p3926_p4 }
 0x156   : > { %p3922_p3 = pneg %p3921_p2 }
 0x158   : > { %p3929_p11 = pnand %p3928_p8, %p3922_p3 }
 0x15a   : > { %3932 = shalt.err (!%p3929_p11)
}
 0x15b   : > { %s5002_s20 = smov 8   ;;  %s5003_s10 = smov 128  }
 0x15c   : > { %3260 = dma.hbm_to_vmem [thread:$0]  (!%p4297_p12), %s4935_s9, 2048, %s584_s4, [#allocation15], %s5003_s10, %s5003_s10, %s5002_s20  }
 0x15d   : > { %s3933_s29 = scalar_lea.hbm %s4937_s11, 256 }
 0x15e   : > { %p3934_p13 = scmp.ne.s32.totalorder %s4937_s11, %s3933_s29  ;;  %p3940_p5 = scmp.lt.u32.totalorder %s3933_s29, %s4937_s11 }
 0x160   : > { %p3936_p1 = pnand %p3934_p13, %p4313_p0 }
 0x162   : > { %p3937_p6 = pneg %p3936_p1 }
 0x164   : > { %p3942_p9 = pnand %p3940_p5, %p3937_p6 }
 0x166   : > { %3945 = shalt.err (!%p3942_p9)
}
 0x167   : > { %s3946_s19 = scalar_lea.vmem %s609_s0, 256  ;;  %p3954_p4 = scmp.lt.s32.totalorder %s609_s0, %s609_s0 }
 0x168   : > { %p3947_p10 = scmp.ne.s32.totalorder %s609_s0, %s3946_s19  ;;  %p3955_p7 = scmp.lt.s32.totalorder %s3946_s19, %s3946_s19 }
 0x16a   : > { %p3949_p2 = pnand %p3947_p10, %p4313_p0  ;;  %p3956_p8 = por %p3955_p7, %p3954_p4 }
 0x16c   : > { %p3950_p3 = pneg %p3949_p2 }
 0x16e   : > { %p3957_p11 = pnand %p3956_p8, %p3950_p3 }
 0x170   : > { %3960 = shalt.err (!%p3957_p11)
}
 0x171   : > { %3266 = dma.hbm_to_vmem [thread:$0]  (!%p4297_p12), %s4937_s11, 256, %s609_s0, [#allocation18]  }
 0x172   : > { %s4130_s10 = smov [#allocation22]   ;;  %s4131_s6 = smov [#allocation25]  }
 0x173   : > { %s635_s26 = sshll.u32 %s4130_s10, 4  ;;  %s661_s25 = sshll.u32 %s4131_s6, 4  ;;  %s636_s26 = int_to_ptr.vmem [resolvable:$true] %s635_s26  ;;  %s662_s25 = int_to_ptr.vmem [resolvable:$true] %s661_s25 }
 0x174   : > { %s3961_s2 = scalar_lea.hbm %s4940_s14, 128 }
 0x175   : > { %p3962_p13 = scmp.ne.s32.totalorder %s4940_s14, %s3961_s2  ;;  %p3968_p5 = scmp.lt.u32.totalorder %s3961_s2, %s4940_s14 }
 0x177   : > { %p3964_p1 = pnand %p3962_p13, %p4313_p0 }
 0x179   : > { %p3965_p6 = pneg %p3964_p1 }
 0x17b   : > { %p3970_p9 = pnand %p3968_p5, %p3965_p6 }
 0x17d   : > { %3973 = shalt.err (!%p3970_p9)
}
 0x17e   : > { %s3974_s0 = scalar_lea.vmem %s636_s26, 128  ;;  %p3982_p4 = scmp.lt.s32.totalorder %s636_s26, %s636_s26 }
 0x17f   : > { %p3975_p10 = scmp.ne.s32.totalorder %s636_s26, %s3974_s0  ;;  %p3983_p7 = scmp.lt.s32.totalorder %s3974_s0, %s3974_s0 }
 0x181   : > { %p3977_p2 = pnand %p3975_p10, %p4313_p0  ;;  %p3984_p8 = por %p3983_p7, %p3982_p4 }
 0x183   : > { %p3978_p3 = pneg %p3977_p2 }
 0x185   : > { %p3985_p11 = pnand %p3984_p8, %p3978_p3 }
 0x187   : > { %3988 = shalt.err (!%p3985_p11)
}
 0x188   : > { %3272 = dma.hbm_to_vmem [thread:$0]  (!%p4297_p12), %s4940_s14, 128, %s636_s26, [#allocation21]  }
 0x189   : > { %s3989_s8 = scalar_lea.hbm %s4943_s17, 1024 }
 0x18a   : > { %p3990_p13 = scmp.ne.s32.totalorder %s4943_s17, %s3989_s8  ;;  %p3996_p5 = scmp.lt.u32.totalorder %s3989_s8, %s4943_s17 }
 0x18c   : > { %p3992_p1 = pnand %p3990_p13, %p4313_p0 }
 0x18e   : > { %p3993_p6 = pneg %p3992_p1 }
 0x190   : > { %p3998_p9 = pnand %p3996_p5, %p3993_p6 }
 0x192   : > { %4001 = shalt.err (!%p3998_p9)
}
 0x193   : > { %s4002_s4 = scalar_lea.vmem %s662_s25, 1024  ;;  %p4010_p4 = scmp.lt.s32.totalorder %s662_s25, %s662_s25 }
 0x194   : > { %p4003_p10 = scmp.ne.s32.totalorder %s662_s25, %s4002_s4  ;;  %p4011_p7 = scmp.lt.s32.totalorder %s4002_s4, %s4002_s4 }
 0x196   : > { %p4005_p2 = pnand %p4003_p10, %p4313_p0  ;;  %p4012_p8 = por %p4011_p7, %p4010_p4 }
 0x198   : > { %p4006_p3 = pneg %p4005_p2 }
 0x19a   : > { %p4013_p11 = pnand %p4012_p8, %p4006_p3 }
 0x19c   : > { %4016 = shalt.err (!%p4013_p11)
}
 0x19d   : > { %3278 = dma.hbm_to_vmem [thread:$0]  (!%p4297_p12), %s4943_s17, 1024, %s662_s25, [#allocation24], %s4997_s3, %s4997_s3, %s4996_s21  }
 0x19e   : > { %p5004_p13 = scmp.ne.s32.totalorder %s4988_s27, 0 }
 0x19f   : > { %p5005_p0 = scmp.eq.s32.totalorder (!%p5004_p13), %s4261_s1, 0 }
 0x1a0   : > { %687 = sbr.rel (%p5004_p13) target bundleno = 2963 (0xb93), region = 96 }
 0x1a7   : > { %4062 = dma.done.wait (%p5005_p0), [#allocation3], 128   ;;  %p5006_p1 = pmov %p5005_p0 }
 0x1a8   : > { %p5007_p6 = pmov %p5005_p0 }
 0x1a9   : > { %4064 = vsyncadd (%p5006_p1), [#allocation3], 4294967168 }
 0x1aa   : > { %4066 = dma.done.wait (%p5007_p6), [#allocation6], 256   ;;  %p5008_p5 = pmov %p5005_p0 }
 0x1ab   : > { %p5009_p9 = pmov %p5005_p0 }
 0x1ac   : > { %4068 = vsyncadd (%p5008_p5), [#allocation6], 4294967040 }
 0x1ad   : > { %4070 = dma.done.wait (%p5009_p9), [#allocation9], 3072   ;;  %p5010_p12 = pmov %p5005_p0 }
 0x1ae   : > { %p5011_p10 = pmov %p5005_p0 }
 0x1af   : > { %4072 = vsyncadd (%p5010_p12), [#allocation9], 4294964224 }
 0x1b0   : > { %4074 = dma.done.wait (%p5011_p10), [#allocation12], 256   ;;  %p5012_p2 = pmov %p5005_p0 }
 0x1b1   : > { %p5013_p3 = pmov %p5005_p0 }
 0x1b2   : > { %4076 = vsyncadd (%p5012_p2), [#allocation12], 4294967040 }
 0x1b3   : > { %4078 = dma.done.wait (%p5013_p3), [#allocation15], 4096   ;;  %p5014_p4 = pmov %p5005_p0 }
 0x1b4   : > { %p5015_p7 = pmov %p5005_p0 }
 0x1b5   : > { %4080 = vsyncadd (%p5014_p4), [#allocation15], 4294963200 }
 0x1b6   : > { %4082 = dma.done.wait (%p5015_p7), [#allocation18], 512   ;;  %p5016_p8 = pmov %p5005_p0 }
 0x1b7   : > { %p5017_p11 = pmov %p5005_p0 }
 0x1b8   : > { %4084 = vsyncadd (%p5016_p8), [#allocation18], 4294966784 }
 0x1b9   : > { %4086 = dma.done.wait (%p5017_p11), [#allocation21], 8320   ;;  %p5018_p13 = pmov %p5005_p0 }
 0x1bb   : > { %4088 = vsyncadd (%p5018_p13), [#allocation21], 4294958976 }
 0x1bc   : > { %4090 = dma.done.wait (%p5005_p0), [#allocation24], 2048   ;;  %p5019_p1 = pmov %p5005_p0 }
 0x1bd   : > { %p798_p6 = scmp.lt.s32.totalorder %s4261_s1, 7  ;;  %v4132_v0 = vmov 0.0   ;;  %vm4133_vm0 = vmmov 0   ;;  %s5020_s3 = sld [smem:[#allocation43_spill]]  ;;  %v3372_v1 = vld [vmem:[#allocation2] sm:$0xff]   ;;  %vm814_vm1 = vcmask 130048   ;;  %v862_v34 = vlaneseq }
 0x1be   : > { %4092 = vsyncadd (%p5019_p1), [#allocation24], 4294965248  ;;  %3101 = vmatprep.subr.bf16.mxu0 %v4132_v0  ;;  %3103 = vmatprep.mubr.msk.bf16.mxu0 %vm4133_vm0, %v4132_v0  ;;  %v807_v4 = vld [vmem:[#allocation5] sm:$0xff]  ;;  %s4134_s20 = smov 127   ;;  %s4135_s10 = smov 1   ;;  %v3373_v11 = vld [vmem:[#allocation8 + $0x40] sm:$0xff]  }
 0x1bf   : > { %s799_s18 = scalar_select %p798_p6, %s4261_s1, 7  ;;  %3102 = vmatpush3.bf16.msra.mxu0 %v3372_v1  ;;  %v3374_v12 = vld [vmem:[#allocation8] sm:$0xff]   ;;  %3008 = vmatprep.subr.bf16.mxu1 %v3373_v11  ;;  %v3375_v13 = vld [vmem:[#allocation8 + $0x48] sm:$0xff]   ;;  %v3377_v15 = vld [vmem:[#allocation8 + $0x50] sm:$0xff]   ;;  %v863_v35 = vshrl.u32 %v862_v34, 7 }
 0x1c0   : > { %3107 = vmatprep.subr.bf16.mxu0 %v4132_v0  ;;  %3009 = vmatpush3.bf16.msra.mxu1 %v3374_v12  ;;  %s4136_s6 = smov 126   ;;  %s4137_s29 = smov 2   ;;  %v3376_v14 = vld [vmem:[#allocation8 + $0x8] sm:$0xff]   ;;  %v3378_v16 = vld [vmem:[#allocation8 + $0x10] sm:$0xff]   ;;  %v3379_v17 = vld [vmem:[#allocation8 + $0x58] sm:$0xff]  }
 0x1c1   : > { %s2847_s27 = sshll.u32 %s799_s18, 3  ;;  %3010 = vmatprep.subr.bf16.mxu1 %v3375_v13  ;;  %v3380_v18 = vld [vmem:[#allocation8 + $0x18] sm:$0xff]   ;;  %v3381_v19 = vld [vmem:[#allocation8 + $0x60] sm:$0xff]   ;;  %v3383_v21 = vld [vmem:[#allocation8 + $0x68] sm:$0xff]   ;;  %v4674_v36 = vsub.s32 0, %v863_v35  ;;  %v4676_v37 = vsub.s32 1, %v863_v35 }
 0x1c2   : > { %v3382_v20 = vld [vmem:[#allocation8 + $0x20] sm:$0xff]   ;;  %v3384_v22 = vld [vmem:[#allocation8 + $0x28] sm:$0xff]   ;;  %v3385_v23 = vld [vmem:[#allocation8 + $0x70] sm:$0xff]   ;;  %v4678_v39 = vsub.s32 2, %v863_v35  ;;  %v4682_v42 = vsub.s32 4, %v863_v35  ;;  %v4684_v43 = vsub.s32 3, %v863_v35 }
 0x1c3   : > { %s801_s25 = scalar_lea.vmem %s5020_s3, %s2847_s27  ;;  %v3386_v24 = vld [vmem:[#allocation8 + $0x30] sm:$0xff]   ;;  %v3387_v25 = vld [vmem:[#allocation8 + $0x78] sm:$0xff]   ;;  %v3389_v27 = vld [vmem:[#allocation10] sm:$0xff]   ;;  %v4687_v45 = vsub.s32 5, %v863_v35  ;;  %v4689_v46 = vsub.s32 6, %v863_v35  ;;  %v4694_v55 = vsub.s32 7, %v863_v35 }
 0x1c4   : > { %v803_v2 = vld [vmem:[%s801_s25] sm:$0xff]  ;;  %3011 = vmatpush3.bf16.msra.mxu1 %v3376_v14  ;;  %v3388_v26 = vld [vmem:[#allocation8 + $0x38] sm:$0xff]   ;;  %v3391_v29 = vld [vmem:[#allocation10 + $0x10] sm:$0xff]   ;;  %s5022_s16 = sld [smem:[#allocation52_spill]]  ;;  %s5023_s19 = sld [smem:[#allocation41_spill]] }
 0x1c5   : > { %v804_v3 = vpack.c.bf16 %v803_v2, %v803_v2  ;;  %3012 = vmatprep.subr.bf16.mxu1 %v3377_v15  ;;  %v3390_v28 = vld [vmem:[#allocation10 + $0x8] sm:$0xff]   ;;  %v3392_v30 = vld [vmem:[#allocation10 + $0x18] sm:$0xff]   ;;  %v3393_v31 = vld [vmem:[#allocation10 + $0x20] sm:$0xff]   ;;  %s3003_s4 = sshll.u32 %s4261_s1, 7  ;;  %s5024_s22 = sld [smem:[#allocation53_spill]] }
 0x1c6   : > { %v3394_v32 = vld [vmem:[#allocation10 + $0x28] sm:$0xff]   ;;  %v3395_v33 = vld [vmem:[#allocation10 + $0x30] sm:$0xff]   ;;  %v859_v38 = vld [vmem:[#allocation7] sm:$0xff]  ;;  %s4139_s25 = smov [#allocation26]  }
 0x1c7   : > { %3104 = vmatmul.mubr.msk.bf16.vlgmr.msra.gmra.mrb[0].mxu0 %vm814_vm1, %v804_v3  ;;  %v865_v40 = vrot.slane %v859_v38, %v4674_v36  ;;  %v871_v41 = vrot.slane %v859_v38, %v4676_v37  ;;  %v879_v44 = vrot.slane %v859_v38, %v4678_v39  ;;  %v900_v49 = vrot.slane %v859_v38, %v4682_v42  ;;  %v3397_v35 = vld [vmem:[#allocation14 + $0x40] sm:$0xff]  }
 0x1c8   : > { %3123 = vmatprep.mubr.msk.bf16.mxu0 %vm4133_vm0, %v4132_v0  ;;  %3013 = vmatpush3.bf16.msra.mxu1 %v3378_v16  ;;  %v894_v52 = vrot.slane %v859_v38, %v4684_v43  ;;  %v906_v56 = vrot.slane %v859_v38, %v4687_v45  ;;  %v912_v58 = vrot.slane %v859_v38, %v4689_v46 }
 0x1c9   : > { %3014 = vmatprep.subr.bf16.mxu1 %v3379_v17  ;;  %3108 = vmatpush3.bf16.msra.mxu0 %v3389_v27  ;;  %v920_v63 = vrot.slane %v859_v38, %v4694_v55 }
 0x1ca   : > { %3109 = vmatprep.subr.bf16.mxu0 %v4132_v0  ;;  %p5025_p9 = scmp.ne.s32.totalorder %s5023_s19, 0 }
 0x1cb   : > { %s4884_s21 = scalar_lea.hbm %s5024_s22, %s3003_s4 }
 0x1cc   : > { %3015 = vmatpush3.bf16.msra.mxu1 %v3380_v18 }
 0x1cd   : > { %3016 = vmatprep.subr.bf16.mxu1 %v3381_v19  ;;  %3110 = vmatpush3.bf16.msra.mxu0 %v3390_v28 }
 0x1ce   : > { %3111 = vmatprep.subr.bf16.mxu0 %v4132_v0 }
 0x1d0   : > { %3017 = vmatpush3.bf16.msra.mxu1 %v3382_v20 }
 0x1d1   : > { %3018 = vmatprep.subr.bf16.mxu1 %v3383_v21  ;;  %3112 = vmatpush3.bf16.msra.mxu0 %v3391_v29 }
 0x1d2   : > { %3113 = vmatprep.subr.bf16.mxu0 %v4132_v0 }
 0x1d4   : > { %3019 = vmatpush3.bf16.msra.mxu1 %v3384_v22 }
 0x1d5   : > { %3020 = vmatprep.subr.bf16.mxu1 %v3385_v23  ;;  %3114 = vmatpush3.bf16.msra.mxu0 %v3392_v30  ;;  %v3396_v23 = vld [vmem:[#allocation10 + $0x38] sm:$0xff]   ;;  %v1115_v30 = vld [vmem:[#allocation11] sm:$0xff] }
 0x1d6   : > { %3115 = vmatprep.subr.bf16.mxu0 %v4132_v0 }
 0x1d8   : > { %3021 = vmatpush3.bf16.msra.mxu1 %v3386_v24 }
 0x1d9   : > { %3022 = vmatprep.subr.bf16.mxu1 %v3387_v25  ;;  %3116 = vmatpush3.bf16.msra.mxu0 %v3393_v31 }
 0x1da   : > { %3117 = vmatprep.subr.bf16.mxu0 %v4132_v0 }
 0x1dc   : > { %3023 = vmatpush3.bf16.msra.mxu1 %v3388_v26 }
 0x1dd   : > { %3118 = vmatpush3.bf16.msra.mxu0 %v3394_v32  ;;  %3039 = vmatprep.subr.bf16.mxu1 %v3397_v35 }
 0x1de   : > { %3119 = vmatprep.subr.bf16.mxu0 %v4132_v0 }
 0x1e1   : > { %3120 = vmatpush3.bf16.msra.mxu0 %v3395_v33 }
 0x1e2   : > { %3121 = vmatprep.subr.bf16.mxu0 %v4132_v0 }
 0x1e5   : > { %3122 = vmatpush3.bf16.msra.mxu0 %v3396_v23 }
 0x29a   : > { %v852_v5 = vpop.f32.mrb[0].mxu0 }
 0x29b   : > { %v853_v6 = vadd.f32 %v852_v5, %v807_v4  ;;  %v3105_v7 = vpop.f32.mrb[1].mxu0 }
 0x29c   : > { %v855_v8 = vpop.f32.mrb[2].mxu0 }
 0x29d   : > { %v4656_v9 = vmax.f32 %v853_v6, 0.0  ;;  %v3106_v10 = vpop.f32.mrb[3].mxu0 }
 0x29f   : > { %874 = vrot.lane.b32.xlu1 %v4656_v9, %s4134_s20  ;;  %860 = vrot.lane.b32.xlu0 %v4656_v9, %s4135_s10  ;;  %v872_v51 = vmul.f32 %v871_v41, %v4656_v9  ;;  %v907_v2 = vmul.f32 %v906_v56, %v4656_v9  ;;  %v3408_v56 = vld [vmem:[#allocation14 + $0x28] sm:$0xff]  }
 0x2a3   : > { %915 = vrot.lane.b32.xlu1 %v4656_v9, %s4136_s6  ;;  %889 = vrot.lane.b32.xlu0 %v4656_v9, %s4137_s29 }
 0x311   : > { %v875_v47 = vpop.permute.xlu1 %874  ;;  %v861_v48 = vpop.permute.xlu0 %860 }
 0x312   : > { %v866_v50 = vmul.f32 %v865_v40, %v861_v48  ;;  %v880_v53 = vmul.f32 %v879_v44, %v875_v47  ;;  %v901_v60 = vmul.f32 %v900_v49, %v861_v48  ;;  %v913_v4 = vmul.f32 %v912_v58, %v875_v47  ;;  %v3399_v44 = vld [vmem:[#allocation14 + $0x48] sm:$0xff]   ;;  %v3401_v48 = vld [vmem:[#allocation14 + $0x50] sm:$0xff]  }
 0x313   : > { %v3400_v47 = vld [vmem:[#allocation14 + $0x8] sm:$0xff]   ;;  %v3402_v49 = vld [vmem:[#allocation14 + $0x10] sm:$0xff]  }
 0x314   : > { %v873_v54 = vadd.f32 %v872_v51, %v866_v50  ;;  %v3403_v50 = vld [vmem:[#allocation14 + $0x58] sm:$0xff]   ;;  %v3410_v58 = vld [vmem:[#allocation14 + $0x30] sm:$0xff]  }
 0x315   : > { %v890_v57 = vpop.permute.xlu0 %889  ;;  %v916_v3 = vpop.permute.xlu1 %915  ;;  %v3404_v51 = vld [vmem:[#allocation14 + $0x18] sm:$0xff]  }
 0x316   : > { %v881_v59 = vadd.f32 %v880_v53, %v873_v54  ;;  %v895_v61 = vmul.f32 %v894_v52, %v890_v57  ;;  %v921_v7 = vmul.f32 %v920_v63, %v916_v3  ;;  %v3405_v52 = vld [vmem:[#allocation14 + $0x60] sm:$0xff]   ;;  %v3407_v54 = vld [vmem:[#allocation14 + $0x68] sm:$0xff]   ;;  %v3409_v57 = vld [vmem:[#allocation14 + $0x70] sm:$0xff]  }
 0x317   : > { %v3406_v53 = vld [vmem:[#allocation14 + $0x20] sm:$0xff]   ;;  %v3418_v63 = vld [vmem:[#allocation16 + $0x14] ss:$8 sps:$4 sm:$0xff]  }
 0x318   : > { %v882_v62 = vsub.f32 0.0, %v881_v59  ;;  %v902_v1 = vadd.f32 %v901_v60, %v895_v61  ;;  %v3411_v59 = vld [vmem:[#allocation14 + $0x78] sm:$0xff]   ;;  %v3413_v61 = vld [vmem:[#allocation16] ss:$8 sps:$4 sm:$0xff]  }
 0x319   : > { %v3412_v60 = vld [vmem:[#allocation14 + $0x38] sm:$0xff]   ;;  %v3419_v3 = vld [vmem:[#allocation16 + $0x20] ss:$8 sps:$4 sm:$0xff]  }
 0x31a   : > { %v883_v5 = vmul.f32 1.442695, %v882_v62  ;;  %v908_v6 = vadd.f32 %v907_v2, %v902_v1  ;;  %v3415_v62 = vld [vmem:[#allocation16 + $0x4] ss:$8 sps:$4 sm:$0xff]   ;;  %v3416_v1 = vld [vmem:[#allocation16 + $0x10] ss:$8 sps:$4 sm:$0xff]  }
 0x31b   : > { %1543 = vmatprep.subr.bf16.mxu0 %v3415_v62  ;;  %v3421_v2 = vld [vmem:[#allocation16 + $0x24] ss:$8 sps:$4 sm:$0xff]  }
 0x31c   : > { %v914_v8 = vadd.f32 %v913_v4, %v908_v6  ;;  %3565 = vpow2.f32 %v883_v5  ;;  %v3424_v4 = vld [vmem:[#allocation16 + $0x34] ss:$8 sps:$4 sm:$0xff]   ;;  %v3422_v5 = vld [vmem:[#allocation16 + $0x30] ss:$8 sps:$4 sm:$0xff]   ;;  %v3427_v6 = vld [vmem:[#allocation16 + $0x44] ss:$8 sps:$4 sm:$0xff]  }
 0x31e   : > { %v922_v10 = vadd.f32 %v921_v7, %v914_v8  ;;  %v3425_v7 = vld [vmem:[#allocation16 + $0x40] ss:$8 sps:$4 sm:$0xff]   ;;  %v3430_v8 = vld [vmem:[#allocation16 + $0x54] ss:$8 sps:$4 sm:$0xff]  }
 0x320   : > { %v923_v11 = vsub.f32 0.0, %v922_v10  ;;  %v3428_v10 = vld [vmem:[#allocation16 + $0x50] ss:$8 sps:$4 sm:$0xff]  }
 0x322   : > { %v924_v12 = vmul.f32 1.442695, %v923_v11  ;;  %v3433_v11 = vld [vmem:[#allocation16 + $0x64] ss:$8 sps:$4 sm:$0xff]  }
 0x324   : > { %3567 = vpow2.f32 %v924_v12  ;;  %v3431_v12 = vld [vmem:[#allocation16 + $0x60] ss:$8 sps:$4 sm:$0xff]  }
 0x326   : > { %v3566_v13 = vpop.eup %3565 }
 0x327   : > { %v885_v14 = vadd.f32 1.0, %v3566_v13  ;;  %v1205_v13 = vld [vmem:[#allocation13] sm:$0xff] }
 0x329   : > { %3569 = vrcp.f32 %v885_v14  ;;  %v1240_v14 = vrot.slane %v1205_v13, %v4684_v43 }
 0x32e   : > { %v3568_v15 = vpop.eup %3567 }
 0x32f   : > { %v926_v16 = vadd.f32 1.0, %v3568_v15  ;;  %v1211_v15 = vrot.slane %v1205_v13, %v4674_v36 }
 0x331   : > { %3571 = vrcp.f32 %v926_v16  ;;  %v1246_v16 = vrot.slane %v1205_v13, %v4682_v42 }
 0x333   : > { %v3570_v17 = vpop.eup %3569 }
 0x334   : > { %v887_v19 = vmul.f32 %v3570_v17, %v4656_v9  ;;  %v1217_v17 = vrot.slane %v1205_v13, %v4676_v37 }
 0x336   : > { %v888_v22 = vpack.c.bf16 %v887_v19, %v887_v19 }
 0x33b   : > { %v3572_v18 = vpop.eup %3571 }
 0x33c   : > { %v928_v20 = vmul.f32 %v3572_v18, %v4656_v9  ;;  %v3398_v9 = vld [vmem:[#allocation14] sm:$0xff]   ;;  %v1252_v18 = vrot.slane %v1205_v13, %v4687_v45 }
 0x33e   : > { %v929_v21 = vpack.c.bf16 %v928_v20, %v928_v20 }
 0x340   : > { %1090 = vmatprep.mubr.bf16.mxu1 %v929_v21  ;;  %v1225_v21 = vrot.slane %v1205_v13, %v4678_v39 }
 0x341   : > { %1091 = vmatmul.mubr.bf16.vlgmr.msra.gmra.mrb[0].mxu1 %v888_v22 }
 0x342   : > { %3040 = vmatpush3.bf16.msra.mxu1 %v3398_v9 }
 0x343   : > { %3041 = vmatprep.subr.bf16.mxu1 %v3399_v44 }
 0x346   : > { %3042 = vmatpush3.bf16.msra.mxu1 %v3400_v47 }
 0x347   : > { %3043 = vmatprep.subr.bf16.mxu1 %v3401_v48 }
 0x34a   : > { %3044 = vmatpush3.bf16.msra.mxu1 %v3402_v49 }
 0x34b   : > { %3045 = vmatprep.subr.bf16.mxu1 %v3403_v50 }
 0x34e   : > { %3046 = vmatpush3.bf16.msra.mxu1 %v3404_v51 }
 0x34f   : > { %3047 = vmatprep.subr.bf16.mxu1 %v3405_v52 }
 0x352   : > { %3048 = vmatpush3.bf16.msra.mxu1 %v3406_v53 }
 0x353   : > { %3049 = vmatprep.subr.bf16.mxu1 %v3407_v54 }
 0x356   : > { %3050 = vmatpush3.bf16.msra.mxu1 %v3408_v56 }
 0x357   : > { %3051 = vmatprep.subr.bf16.mxu1 %v3409_v57 }
 0x35a   : > { %3052 = vmatpush3.bf16.msra.mxu1 %v3410_v58 }
 0x35b   : > { %3053 = vmatprep.subr.bf16.mxu1 %v3411_v59 }
 0x35e   : > { %3054 = vmatpush3.bf16.msra.mxu1 %v3412_v60 }
 0x414   : > { %v3024_v24 = vpop.f32.mrb[0].mxu1 }
 0x415   : > { %v3025_v25 = vpop.f32.mrb[1].mxu1 }
 0x416   : > { %v3026_v26 = vadd.f32 %v3025_v25, %v3024_v24  ;;  %v3027_v27 = vpop.f32.mrb[2].mxu1  ;;  %v1258_v25 = vrot.slane %v1205_v13, %v4689_v46 }
 0x417   : > { %v3028_v28 = vpop.f32.mrb[3].mxu1 }
 0x418   : > { %v1098_v29 = vpack.c.bf16 %v3026_v26, %v3026_v26  ;;  %v1266_v28 = vrot.slane %v1205_v13, %v4694_v55  ;;  %v3445_v13 = vld [vmem:[#allocation20 + $0x24] ss:$8 sps:$4 sm:$0xff]  }
 0x41a   : > { %3124 = vmatmul.mubr.bf16.vlgmr.msra.gmra.mrb[4].mxu0 %v1098_v29 }
 0x41b   : > { %1544 = vmatpush1.bf16.msra.mxu0 %v3413_v61 }
 0x41c   : > { %1545 = vmatprep.subr.bf16.mxu0 %v3418_v63  ;;  %v3436_v63 = vld [vmem:[#allocation16 + $0x74] ss:$8 sps:$4 sm:$0xff]  }
 0x41f   : > { %1546 = vmatpush1.bf16.msra.mxu0 %v3416_v1  ;;  %v3434_v1 = vld [vmem:[#allocation16 + $0x70] ss:$8 sps:$4 sm:$0xff]  }
 0x420   : > { %1547 = vmatprep.subr.bf16.mxu0 %v3421_v2  ;;  %v4138_v2 = vmov 0  }
 0x421   : > { %1575 = vmatprep.mubr.bf16.mxu0 %v4138_v2  ;;  %v3537_v2 = vld [vmem:[%s4939_s13 + $0x50] sm:$0xff]  }
 0x423   : > { %1548 = vmatpush1.bf16.msra.mxu0 %v3419_v3 }
 0x424   : > { %1549 = vmatprep.subr.bf16.mxu0 %v3424_v4 }
 0x427   : > { %1550 = vmatpush1.bf16.msra.mxu0 %v3422_v5 }
 0x428   : > { %1551 = vmatprep.subr.bf16.mxu0 %v3427_v6 }
 0x42b   : > { %1552 = vmatpush1.bf16.msra.mxu0 %v3425_v7 }
 0x42c   : > { %1553 = vmatprep.subr.bf16.mxu0 %v3430_v8 }
 0x42f   : > { %1554 = vmatpush1.bf16.msra.mxu0 %v3428_v10  ;;  %v3437_v10 = vld [vmem:[#allocation20] ss:$8 sps:$4 sm:$0xff]  }
 0x430   : > { %1555 = vmatprep.subr.bf16.mxu0 %v3433_v11  ;;  %v3439_v11 = vld [vmem:[#allocation20 + $0x4] ss:$8 sps:$4 sm:$0xff]  }
 0x431   : > { %2126 = vmatprep.subr.bf16.mxu1 %v3439_v11  ;;  %v4780_v11 = vld [vmem:[#allocation19] sm:$0xff] }
 0x433   : > { %1556 = vmatpush1.bf16.msra.mxu0 %v3431_v12  ;;  %v3440_v12 = vld [vmem:[#allocation20 + $0x10] ss:$8 sps:$4 sm:$0xff]  }
 0x434   : > { %1557 = vmatprep.subr.bf16.mxu0 %v3436_v63  ;;  %v3535_v63 = vld [vmem:[%s4939_s13 + $0x48] sm:$0xff]  }
 0x437   : > { %1558 = vmatpush1.bf16.msra.mxu0 %v3434_v1  ;;  %v3536_v1 = vld [vmem:[%s4939_s13 + $0x8] sm:$0xff]  }
 0x4ed   : > { %v1198_v31 = vpop.f32.mrb[4].mxu0 }
 0x4ee   : > { %v1199_v32 = vadd.f32 %v1198_v31, %v1115_v30  ;;  %v3125_v33 = vpop.f32.mrb[5].mxu0 }
 0x4ef   : > { %v1201_v38 = vpop.f32.mrb[6].mxu0 }
 0x4f0   : > { %v4702_v40 = vmax.f32 %v1199_v32, 0.0  ;;  %v3126_v41 = vpop.f32.mrb[7].mxu0 }
 0x4f2   : > { %1235 = vrot.lane.b32.xlu1 %v4702_v40, %s4137_s29  ;;  %1206 = vrot.lane.b32.xlu0 %v4702_v40, %s4135_s10  ;;  %v1218_v26 = vmul.f32 %v1217_v17, %v4702_v40  ;;  %v1253_v29 = vmul.f32 %v1252_v18, %v4702_v40  ;;  %v3451_v17 = vld [vmem:[#allocation20 + $0x44] ss:$8 sps:$4 sm:$0xff]   ;;  %v3449_v18 = vld [vmem:[#allocation20 + $0x40] ss:$8 sps:$4 sm:$0xff]  }
 0x4f6   : > { %1261 = vrot.lane.b32.xlu1 %v4702_v40, %s4136_s6  ;;  %1220 = vrot.lane.b32.xlu0 %v4702_v40, %s4134_s20 }
 0x564   : > { %v1236_v19 = vpop.permute.xlu1 %1235  ;;  %v1207_v20 = vpop.permute.xlu0 %1206 }
 0x565   : > { %v1241_v22 = vmul.f32 %v1240_v14, %v1236_v19  ;;  %v1212_v23 = vmul.f32 %v1211_v15, %v1207_v20  ;;  %v1247_v24 = vmul.f32 %v1246_v16, %v1207_v20  ;;  %v3443_v14 = vld [vmem:[#allocation20 + $0x20] ss:$8 sps:$4 sm:$0xff]   ;;  %v3448_v15 = vld [vmem:[#allocation20 + $0x34] ss:$8 sps:$4 sm:$0xff]   ;;  %v3446_v16 = vld [vmem:[#allocation20 + $0x30] ss:$8 sps:$4 sm:$0xff]  }
 0x566   : > { %v3454_v19 = vld [vmem:[#allocation20 + $0x54] ss:$8 sps:$4 sm:$0xff]   ;;  %v3452_v20 = vld [vmem:[#allocation20 + $0x50] ss:$8 sps:$4 sm:$0xff]  }
 0x567   : > { %v1248_v27 = vadd.f32 %v1247_v24, %v1241_v22  ;;  %v1219_v32 = vadd.f32 %v1218_v26, %v1212_v23  ;;  %v3455_v22 = vld [vmem:[#allocation20 + $0x60] ss:$8 sps:$4 sm:$0xff]   ;;  %v3460_v23 = vld [vmem:[#allocation20 + $0x74] ss:$8 sps:$4 sm:$0xff]  }
 0x568   : > { %v1262_v30 = vpop.permute.xlu1 %1261  ;;  %v1221_v31 = vpop.permute.xlu0 %1220  ;;  %v1461_v24 = vld [vmem:[#allocation17] sm:$0xff]  ;;  %v1462_v26 = vld [vmem:[#allocation17 + $0x8] sm:$0xff] }
 0x569   : > { %v1226_v33 = vmul.f32 %v1225_v21, %v1221_v31  ;;  %v1254_v35 = vadd.f32 %v1253_v29, %v1248_v27  ;;  %v1259_v38 = vmul.f32 %v1258_v25, %v1221_v31  ;;  %v1267_v9 = vmul.f32 %v1266_v28, %v1262_v30  ;;  %v3457_v21 = vld [vmem:[#allocation20 + $0x64] ss:$8 sps:$4 sm:$0xff]   ;;  %v3458_v25 = vld [vmem:[#allocation20 + $0x70] ss:$8 sps:$4 sm:$0xff]  }
 0x56a   : > { %v3463_v30 = vld [vmem:[#allocation20 + $0x84] ss:$8 sps:$4 sm:$0xff]  }
 0x56b   : > { %v1227_v41 = vadd.f32 %v1226_v33, %v1219_v32  ;;  %v1260_v44 = vadd.f32 %v1259_v38, %v1254_v35  ;;  %v3461_v33 = vld [vmem:[#allocation20 + $0x80] ss:$8 sps:$4 sm:$0xff]  }
 0x56d   : > { %v1228_v47 = vsub.f32 0.0, %v1227_v41  ;;  %v1268_v48 = vadd.f32 %v1267_v9, %v1260_v44  ;;  %v3466_v41 = vld [vmem:[#allocation20 + $0x94] ss:$8 sps:$4 sm:$0xff]   ;;  %v3464_v44 = vld [vmem:[#allocation20 + $0x90] ss:$8 sps:$4 sm:$0xff]  }
 0x56f   : > { %v1229_v49 = vmul.f32 1.442695, %v1228_v47  ;;  %v1269_v50 = vsub.f32 0.0, %v1268_v48  ;;  %v3469_v47 = vld [vmem:[#allocation20 + $0xa4] ss:$8 sps:$4 sm:$0xff]  }
 0x570   : > { %v3467_v48 = vld [vmem:[#allocation20 + $0xa0] ss:$8 sps:$4 sm:$0xff]  }
 0x571   : > { %3573 = vpow2.f32 %v1229_v49  ;;  %v1270_v51 = vmul.f32 1.442695, %v1269_v50  ;;  %v3472_v49 = vld [vmem:[#allocation20 + $0xb4] ss:$8 sps:$4 sm:$0xff]   ;;  %v3470_v50 = vld [vmem:[#allocation20 + $0xb0] ss:$8 sps:$4 sm:$0xff]  }
 0x573   : > { %3575 = vpow2.f32 %v1270_v51  ;;  %v3475_v51 = vld [vmem:[#allocation20 + $0xc4] ss:$8 sps:$4 sm:$0xff]  }
 0x57b   : > { %v3574_v52 = vpop.eup %3573 }
 0x57c   : > { %v1231_v53 = vadd.f32 1.0, %v3574_v52  ;;  %v3473_v52 = vld [vmem:[#allocation20 + $0xc0] ss:$8 sps:$4 sm:$0xff]  }
 0x57d   : > { %v3576_v54 = vpop.eup %3575 }
 0x57e   : > { %3577 = vrcp.f32 %v1231_v53  ;;  %v1272_v56 = vadd.f32 1.0, %v3576_v54  ;;  %v3478_v53 = vld [vmem:[#allocation20 + $0xd4] ss:$8 sps:$4 sm:$0xff]   ;;  %v3476_v54 = vld [vmem:[#allocation20 + $0xd0] ss:$8 sps:$4 sm:$0xff]  }
 0x580   : > { %3579 = vrcp.f32 %v1272_v56  ;;  %v3481_v56 = vld [vmem:[#allocation20 + $0xe4] ss:$8 sps:$4 sm:$0xff]  }
 0x588   : > { %v3578_v57 = vpop.eup %3577 }
 0x589   : > { %v1233_v59 = vmul.f32 %v3578_v57, %v4702_v40  ;;  %v3479_v57 = vld [vmem:[#allocation20 + $0xe0] ss:$8 sps:$4 sm:$0xff]  }
 0x58a   : > { %v3580_v58 = vpop.eup %3579 }
 0x58b   : > { %v1274_v60 = vmul.f32 %v3580_v58, %v4702_v40  ;;  %v1234_v62 = vpack.c.bf16 %v1233_v59, %v1233_v59  ;;  %v3442_v40 = vld [vmem:[#allocation20 + $0x14] ss:$8 sps:$4 sm:$0xff]   ;;  %v3482_v59 = vld [vmem:[#allocation20 + $0xf0] ss:$8 sps:$4 sm:$0xff]  }
 0x58c   : > { %v3484_v58 = vld [vmem:[#allocation20 + $0xf4] ss:$8 sps:$4 sm:$0xff]  }
 0x58d   : > { %v1275_v61 = vpack.c.bf16 %v1274_v60, %v1274_v60  ;;  %v3487_v60 = vld [vmem:[#allocation20 + $0x104] ss:$8 sps:$4 sm:$0xff]  }
 0x58f   : > { %1436 = vmatprep.mubr.bf16.mxu1 %v1275_v61  ;;  %v3533_v61 = vld [vmem:[%s4939_s13 + $0x40] sm:$0xff]  }
 0x590   : > { %1437 = vmatmul.mubr.bf16.vlgmr.msra.gmra.mrb[4].mxu1 %v1234_v62  ;;  %v3534_v62 = vld [vmem:[%s4939_s13] sm:$0xff]   ;;  %3061 = vmatprep.subr.bf16.mxu0 %v3533_v61 }
 0x591   : > { %2127 = vmatpush1.bf16.msra.mxu1 %v3437_v10  ;;  %v3543_v10 = vld [vmem:[%s4939_s13 + $0x68] sm:$0xff]  }
 0x592   : > { %2128 = vmatprep.subr.bf16.mxu1 %v3442_v40  ;;  %v1587_v40 = vld [vmem:[#allocation19 + $0x8] sm:$0xff] }
 0x595   : > { %2129 = vmatpush1.bf16.msra.mxu1 %v3440_v12  ;;  %v1600_v12 = vrot.slane %v4780_v11, %v4674_v36 }
 0x596   : > { %2130 = vmatprep.subr.bf16.mxu1 %v3445_v13 }
 0x599   : > { %2131 = vmatpush1.bf16.msra.mxu1 %v3443_v14  ;;  %v3544_v14 = vld [vmem:[%s4939_s13 + $0x28] sm:$0xff]  }
 0x59a   : > { %2132 = vmatprep.subr.bf16.mxu1 %v3448_v15  ;;  %v1612_v15 = vrot.slane %v4780_v11, %v4676_v37 }
 0x59d   : > { %2133 = vmatpush1.bf16.msra.mxu1 %v3446_v16  ;;  %v1616_v16 = vrot.slane %v1587_v40, %v4676_v37 }
 0x59e   : > { %2134 = vmatprep.subr.bf16.mxu1 %v3451_v17 }
 0x5a1   : > { %2135 = vmatpush1.bf16.msra.mxu1 %v3449_v18  ;;  %v3545_v18 = vld [vmem:[%s4939_s13 + $0x70] sm:$0xff]  }
 0x5a2   : > { %2136 = vmatprep.subr.bf16.mxu1 %v3454_v19 }
 0x5a5   : > { %2137 = vmatpush1.bf16.msra.mxu1 %v3452_v20 }
 0x5a6   : > { %2138 = vmatprep.subr.bf16.mxu1 %v3457_v21 }
 0x5a9   : > { %2139 = vmatpush1.bf16.msra.mxu1 %v3455_v22  ;;  %v1631_v22 = vrot.slane %v4780_v11, %v4678_v39 }
 0x5aa   : > { %2140 = vmatprep.subr.bf16.mxu1 %v3460_v23  ;;  %v1635_v23 = vrot.slane %v1587_v40, %v4678_v39  ;;  %v1668_v39 = vrot.slane %v1587_v40, %v4684_v43 }
 0x5ad   : > { %2141 = vmatpush1.bf16.msra.mxu1 %v3458_v25  ;;  %v1680_v25 = vrot.slane %v1587_v40, %v4682_v42 }
 0x5ae   : > { %2142 = vmatprep.subr.bf16.mxu1 %v3463_v30 }
 0x5b1   : > { %2143 = vmatpush1.bf16.msra.mxu1 %v3461_v33 }
 0x5b2   : > { %2144 = vmatprep.subr.bf16.mxu1 %v3466_v41 }
 0x5b5   : > { %2145 = vmatpush1.bf16.msra.mxu1 %v3464_v44  ;;  %v1692_v44 = vrot.slane %v1587_v40, %v4687_v45 }
 0x5b6   : > { %2146 = vmatprep.subr.bf16.mxu1 %v3469_v47 }
 0x5b9   : > { %2147 = vmatpush1.bf16.msra.mxu1 %v3467_v48 }
 0x5ba   : > { %2148 = vmatprep.subr.bf16.mxu1 %v3472_v49 }
 0x5bd   : > { %2149 = vmatpush1.bf16.msra.mxu1 %v3470_v50  ;;  %v1704_v50 = vrot.slane %v1587_v40, %v4689_v46 }
 0x5be   : > { %2150 = vmatprep.subr.bf16.mxu1 %v3475_v51 }
 0x5c1   : > { %2151 = vmatpush1.bf16.msra.mxu1 %v3473_v52 }
 0x5c2   : > { %2152 = vmatprep.subr.bf16.mxu1 %v3478_v53 }
 0x5c5   : > { %2153 = vmatpush1.bf16.msra.mxu1 %v3476_v54 }
 0x5c6   : > { %2154 = vmatprep.subr.bf16.mxu1 %v3481_v56 }
 0x5c9   : > { %2155 = vmatpush1.bf16.msra.mxu1 %v3479_v57 }
 0x5ca   : > { %2156 = vmatprep.subr.bf16.mxu1 %v3484_v58 }
 0x5cd   : > { %2157 = vmatpush1.bf16.msra.mxu1 %v3482_v59 }
 0x5ce   : > { %2167 = vmatprep.subr.bf16.mxu1 %v3487_v60 }
 0x663   : > { %v3055_v3 = vpop.f32.mrb[4].mxu1 }
 0x664   : > { %v3056_v4 = vpop.f32.mrb[5].mxu1 }
 0x665   : > { %v3057_v5 = vadd.f32 %v3056_v4, %v3055_v3  ;;  %v3058_v6 = vpop.f32.mrb[6].mxu1  ;;  %v3538_v3 = vld [vmem:[%s4939_s13 + $0x10] sm:$0xff]   ;;  %v3539_v4 = vld [vmem:[%s4939_s13 + $0x58] sm:$0xff]  }
 0x666   : > { %v3059_v7 = vpop.f32.mrb[7].mxu1  ;;  %v3541_v6 = vld [vmem:[%s4939_s13 + $0x60] sm:$0xff]  }
 0x667   : > { %v1444_v8 = vpack.c.bf16 %v3057_v5, %v3057_v5  ;;  %v3540_v5 = vld [vmem:[%s4939_s13 + $0x18] sm:$0xff]   ;;  %v4772_v7 = vand.u32 127, %v862_v34  ;;  %v1604_v34 = vrot.slane %v1587_v40, %v4674_v36 }
 0x669   : > { %1576 = vmatmul.mubr.bf16.vlgmr.msra.gmra.mrb[8].mxu0 %v1444_v8  ;;  %v3542_v8 = vld [vmem:[%s4939_s13 + $0x20] sm:$0xff]   ;;  %vm1594_vm2 = vcmp.lt.s32.totalorder %v4772_v7, 1  ;;  %vm1625_vm3 = vcmp.lt.s32.totalorder %v4772_v7, 127  ;;  %vm1658_vm4 = vcmp.lt.s32.totalorder %v4772_v7, 2  ;;  %vm1713_vm5 = vcmp.lt.s32.totalorder %v4772_v7, 126 }
 0x66a   : > { %3062 = vmatpush3.bf16.msra.mxu0 %v3534_v62  ;;  %v1723_v62 = vrot.slane %v1587_v40, %v4694_v55  ;;  %v3506_v7 = vld [vmem:[#allocation20 + $0x170] ss:$8 sps:$4 sm:$0xff]  }
 0x66b   : > { %3063 = vmatprep.subr.bf16.mxu0 %v3535_v63 }
 0x66e   : > { %3064 = vmatpush3.bf16.msra.mxu0 %v3536_v1 }
 0x66f   : > { %3065 = vmatprep.subr.bf16.mxu0 %v3537_v2 }
 0x672   : > { %3066 = vmatpush3.bf16.msra.mxu0 %v3538_v3 }
 0x673   : > { %3067 = vmatprep.subr.bf16.mxu0 %v3539_v4 }
 0x676   : > { %3068 = vmatpush3.bf16.msra.mxu0 %v3540_v5 }
 0x677   : > { %3069 = vmatprep.subr.bf16.mxu0 %v3541_v6 }
 0x67a   : > { %3070 = vmatpush3.bf16.msra.mxu0 %v3542_v8 }
 0x67b   : > { %3071 = vmatprep.subr.bf16.mxu0 %v3543_v10 }
 0x67e   : > { %3072 = vmatpush3.bf16.msra.mxu0 %v3544_v14 }
 0x67f   : > { %3073 = vmatprep.subr.bf16.mxu0 %v3545_v18 }
 0x73c   : > { %v1577_v27 = vpop.f32.mrb[8].mxu0 }
 0x73d   : > { %v1578_v28 = vadd.f32 %v1577_v27, %v1461_v24  ;;  %v1579_v29 = vpop.f32.mrb[9].mxu0  ;;  %v3546_v24 = vld [vmem:[%s4939_s13 + $0x30] sm:$0xff]  }
 0x73e   : > { %v1580_v31 = vadd.f32 %v1579_v29, %v1462_v26  ;;  %v1581_v32 = vpop.f32.mrb[10].mxu0  ;;  %3074 = vmatpush3.bf16.msra.mxu0 %v3546_v24  ;;  %v1676_v24 = vrot.slane %v4780_v11, %v4682_v42  ;;  %v1700_v42 = vrot.slane %v4780_v11, %v4689_v46 }
 0x73f   : > { %v4724_v35 = vmax.f32 %v1578_v28, 0.0  ;;  %v1582_v38 = vpop.f32.mrb[11].mxu0 }
 0x740   : > { %v4726_v9 = vmax.f32 %v1580_v31, 0.0 }
 0x741   : > { %1588 = vrot.lane.b32.xlu0 %v4724_v35, %s4135_s10  ;;  %v1617_v26 = vmul.f32 %v1612_v15, %v4724_v35 }
 0x742   : > { %1590 = vrot.lane.b32.xlu1 %v4726_v9, %s4135_s10  ;;  %v1618_v27 = vmul.f32 %v1616_v16, %v4726_v9  ;;  %v1694_v57 = vmul.f32 %v1692_v44, %v4726_v9 }
 0x745   : > { %1621 = vrot.lane.b32.xlu0 %v4724_v35, %s4134_s20 }
 0x746   : > { %1623 = vrot.lane.b32.xlu1 %v4726_v9, %s4134_s20  ;;  %s4021_s20 = sshll.u32 %s4139_s25, 4  ;;  %s4022_s20 = int_to_ptr.vmem [resolvable:$false] %s4021_s20 }
 0x747   : > { %s4023_s10 = scalar_lea.vmem %s4022_s20, 256 }
 0x749   : > { %1654 = vrot.lane.b32.xlu0 %v4724_v35, %s4137_s29 }
 0x74a   : > { %1656 = vrot.lane.b32.xlu1 %v4726_v9, %s4137_s29  ;;  %s795_s29 = sand.u32 1, %s4103_s30  }
 0x74b   : > { %s2846_s8 = sshll.u32 %s795_s29, 3  ;;  %s2595_s3 = scalar_lea.sflag [#allocation4], %s795_s29 }
 0x74c   : > { %s797_s26 = scalar_lea.vmem [#allocation26], %s2846_s8 }
 0x74d   : > { %1709 = vrot.lane.b32.xlu0 %v4724_v35, %s4136_s6  ;;  %s2608_s0 = sshll.u32 %s797_s26, 4  ;;  %s4886_s0 = int_to_ptr.vmem [resolvable:$true] %s2608_s0 }
 0x74e   : > { %1711 = vrot.lane.b32.xlu1 %v4726_v9, %s4136_s6  ;;  %s5021_s6 = sld [smem:[#allocation51_spill]]  ;;  %s4017_s1 = scalar_lea.vmem %s4886_s0, 128 }
 0x74f   : > { %p4018_p5 = scmp.ne.s32.totalorder %s4886_s0, %s4017_s1  ;;  %p4024_p2 = scmp.lt.s32.totalorder %s4886_s0, %s4022_s20 }
 0x750   : > { %p4025_p3 = scmp.lt.s32.totalorder %s4023_s10, %s4017_s1 }
 0x751   : > { %p4019_p12 = pnand %p4018_p5, %p5025_p9 }
 0x752   : > { %p4026_p4 = por %p4025_p3, %p4024_p2 }
 0x753   : > { %p4020_p10 = pneg %p4019_p12 }
 0x755   : > { %p4027_p7 = pnand %p4026_p4, %p4020_p10 }
 0x7b3   : > { %v1589_v13 = vpop.permute.xlu0 %1588 }
 0x7b4   : > { %v1591_v17 = vpop.permute.xlu1 %1590 }
 0x7b5   : > { %v1595_v19 = vsel %vm1594_vm2, %v1589_v13, %v1591_v17  ;;  %v4795_v20 = vsel %vm1594_vm2, %v1591_v17, %v1589_v13 }
 0x7b6   : > { %v1605_v36 = vmul.f32 %v1600_v12, %v4795_v20  ;;  %v1606_v21 = vmul.f32 %v1604_v34, %v1595_v19  ;;  %v1682_v52 = vmul.f32 %v1680_v25, %v1595_v19  ;;  %v3490_v25 = vld [vmem:[#allocation20 + $0x114] ss:$8 sps:$4 sm:$0xff]  }
 0x7b7   : > { %v1622_v37 = vpop.permute.xlu0 %1621 }
 0x7b8   : > { %v1624_v28 = vpop.permute.xlu1 %1623  ;;  %v1619_v31 = vadd.f32 %v1617_v26, %v1605_v36  ;;  %v1620_v32 = vadd.f32 %v1618_v27, %v1606_v21  ;;  %v1664_v36 = vrot.slane %v4780_v11, %v4684_v43  ;;  %v3488_v27 = vld [vmem:[#allocation20 + $0x110] ss:$8 sps:$4 sm:$0xff]   ;;  %v1688_v43 = vrot.slane %v4780_v11, %v4687_v45 }
 0x7b9   : > { %v4808_v29 = vsel %vm1625_vm3, %v1622_v37, %v1624_v28  ;;  %v1627_v30 = vsel %vm1625_vm3, %v1624_v28, %v1622_v37  ;;  %v3485_v37 = vld [vmem:[#allocation20 + $0x100] ss:$8 sps:$4 sm:$0xff]   ;;  %v1681_v28 = vmul.f32 %v1676_v24, %v4795_v20  ;;  %v3494_v45 = vld [vmem:[#allocation20 + $0x130] ss:$8 sps:$4 sm:$0xff]  }
 0x7ba   : > { %v1636_v33 = vmul.f32 %v1631_v22, %v4808_v29  ;;  %v1637_v38 = vmul.f32 %v1635_v23, %v1627_v30  ;;  %v1706_v2 = vmul.f32 %v1704_v50, %v1627_v30  ;;  %v3493_v30 = vld [vmem:[#allocation20 + $0x124] ss:$8 sps:$4 sm:$0xff]   ;;  %v3497_v50 = vld [vmem:[#allocation20 + $0x140] ss:$8 sps:$4 sm:$0xff]   ;;  %v3550_v24 = vld [vmem:[#allocation23 + $0x8] sm:$0xff]  }
 0x7bb   : > { %v1655_v41 = vpop.permute.xlu0 %1654 }
 0x7bc   : > { %v1638_v47 = vadd.f32 %v1636_v33, %v1619_v31  ;;  %v1639_v48 = vadd.f32 %v1637_v38, %v1620_v32  ;;  %v1657_v49 = vpop.permute.xlu1 %1656  ;;  %v3491_v32 = vld [vmem:[#allocation20 + $0x120] ss:$8 sps:$4 sm:$0xff]   ;;  %v1693_v38 = vmul.f32 %v1688_v43, %v4724_v35  ;;  %v3555_v43 = vld [vmem:[#allocation23 + $0x30] sm:$0xff]  }
 0x7bd   : > { %v1659_v51 = vsel %vm1658_vm4, %v1655_v41, %v1657_v49  ;;  %v1660_v22 = vsel %vm1658_vm4, %v1657_v49, %v1655_v41  ;;  %v3496_v41 = vld [vmem:[#allocation20 + $0x134] ss:$8 sps:$4 sm:$0xff]   ;;  %v3499_v49 = vld [vmem:[#allocation20 + $0x144] ss:$8 sps:$4 sm:$0xff]  }
 0x7be   : > { %v1640_v53 = vsub.f32 0.0, %v1638_v47  ;;  %v1641_v54 = vsub.f32 0.0, %v1639_v48  ;;  %v1670_v56 = vmul.f32 %v1668_v39, %v1659_v51  ;;  %v1669_v26 = vmul.f32 %v1664_v36, %v1660_v22 }
 0x7bf   : > { %v4819_v58 = vpop.permute.xlu0 %1709  ;;  %v1705_v47 = vmul.f32 %v1700_v42, %v4808_v29  ;;  %v1719_v48 = vrot.slane %v4780_v11, %v4694_v55  ;;  %v3505_v29 = vld [vmem:[#allocation20 + $0x164] ss:$8 sps:$4 sm:$0xff]   ;;  %v3503_v55 = vld [vmem:[#allocation20 + $0x160] ss:$8 sps:$4 sm:$0xff]   ;;  %v3508_v11 = vld [vmem:[#allocation20 + $0x174] ss:$8 sps:$4 sm:$0xff]  }
 0x7c0   : > { %v1642_v59 = vmul.f32 1.442695, %v1640_v53  ;;  %v1644_v60 = vmul.f32 1.442695, %v1641_v54  ;;  %v1684_v61 = vadd.f32 %v1682_v52, %v1670_v56  ;;  %v1712_v63 = vpop.permute.xlu1 %1711  ;;  %v1683_v31 = vadd.f32 %v1681_v28, %v1669_v26  ;;  %v3502_v52 = vld [vmem:[#allocation20 + $0x154] ss:$8 sps:$4 sm:$0xff]  }
 0x7c1   : > { %v1715_v1 = vsel %vm1713_vm5, %v1712_v63, %v4819_v58  ;;  %v1714_v46 = vsel %vm1713_vm5, %v4819_v58, %v1712_v63  ;;  %v3500_v54 = vld [vmem:[#allocation20 + $0x150] ss:$8 sps:$4 sm:$0xff]   ;;  %v3511_v58 = vld [vmem:[#allocation20 + $0x184] ss:$8 sps:$4 sm:$0xff]   ;;  %v3515_v63 = vld [vmem:[#allocation20 + $0x1a0] ss:$8 sps:$4 sm:$0xff]  }
 0x7c2   : > { %3581 = vpow2.f32 %v1642_v59  ;;  %v1696_v3 = vadd.f32 %v1694_v57, %v1684_v61  ;;  %v1725_v5 = vmul.f32 %v1723_v62, %v1715_v1  ;;  %v1695_v20 = vadd.f32 %v1693_v38, %v1683_v31  ;;  %v3509_v59 = vld [vmem:[#allocation20 + $0x180] ss:$8 sps:$4 sm:$0xff]   ;;  %v3512_v61 = vld [vmem:[#allocation20 + $0x190] ss:$8 sps:$4 sm:$0xff]   ;;  %v3517_v62 = vld [vmem:[#allocation20 + $0x1a4] ss:$8 sps:$4 sm:$0xff]  }
 0x7c3   : > { %3583 = vpow2.f32 %v1644_v60  ;;  %v1724_v51 = vmul.f32 %v1719_v48, %v1714_v46  ;;  %v3514_v60 = vld [vmem:[#allocation20 + $0x194] ss:$8 sps:$4 sm:$0xff]   ;;  %v3552_v26 = vld [vmem:[#allocation23 + $0x18] sm:$0xff]   ;;  %v3561_v46 = vld [vmem:[#allocation25 + $0x20] sm:$0xff]  }
 0x7c4   : > { %v1708_v4 = vadd.f32 %v1706_v2, %v1696_v3  ;;  %v3520_v2 = vld [vmem:[#allocation20 + $0x1b4] ss:$8 sps:$4 sm:$0xff]   ;;  %v2242_v31 = vld [vmem:[#allocation22] sm:$0xff] }
 0x7c5   : > { %v3554_v28 = vld [vmem:[#allocation23 + $0x28] sm:$0xff]   ;;  %v3559_v48 = vld [vmem:[#allocation25 + $0x10] sm:$0xff]  }
 0x7c6   : > { %v1727_v6 = vadd.f32 %v1725_v5, %v1708_v4  ;;  %v3518_v4 = vld [vmem:[#allocation20 + $0x1b0] ss:$8 sps:$4 sm:$0xff]   ;;  %v3523_v5 = vld [vmem:[#allocation20 + $0x1c4] ss:$8 sps:$4 sm:$0xff]  }
 0x7c8   : > { %v1729_v8 = vsub.f32 0.0, %v1727_v6  ;;  %v3521_v6 = vld [vmem:[#allocation20 + $0x1c0] ss:$8 sps:$4 sm:$0xff]  }
 0x7ca   : > { %v1732_v10 = vmul.f32 1.442695, %v1729_v8  ;;  %v3526_v8 = vld [vmem:[#allocation20 + $0x1d4] ss:$8 sps:$4 sm:$0xff]  }
 0x7cc   : > { %v3582_v12 = vpop.eup %3581  ;;  %3585 = vpow2.f32 %v1732_v10  ;;  %v3524_v10 = vld [vmem:[#allocation20 + $0x1d0] ss:$8 sps:$4 sm:$0xff]  }
 0x7cd   : > { %v3584_v34 = vpop.eup %3583  ;;  %v1646_v13 = vadd.f32 1.0, %v3582_v12  ;;  %v3529_v12 = vld [vmem:[#allocation20 + $0x1e4] ss:$8 sps:$4 sm:$0xff]  }
 0x7ce   : > { %v1647_v14 = vadd.f32 1.0, %v3584_v34  ;;  %v3527_v34 = vld [vmem:[#allocation20 + $0x1e0] ss:$8 sps:$4 sm:$0xff]  }
 0x7cf   : > { %3587 = vrcp.f32 %v1646_v13  ;;  %v3532_v13 = vld [vmem:[#allocation20 + $0x1f4] ss:$8 sps:$4 sm:$0xff]  }
 0x7d0   : > { %3589 = vrcp.f32 %v1647_v14 }
 0x7d6   : > { %v3586_v40 = vpop.eup %3585 }
 0x7d7   : > { %v1735_v15 = vadd.f32 1.0, %v3586_v40  ;;  %v3530_v40 = vld [vmem:[#allocation20 + $0x1f0] ss:$8 sps:$4 sm:$0xff]  }
 0x7d9   : > { %v3588_v16 = vpop.eup %3587  ;;  %3591 = vrcp.f32 %v1735_v15 }
 0x7da   : > { %v3590_v17 = vpop.eup %3589  ;;  %v1650_v18 = vmul.f32 %v3588_v16, %v4724_v35 }
 0x7db   : > { %v1651_v19 = vmul.f32 %v3590_v17, %v4726_v9  ;;  %v3547_v17 = vld [vmem:[%s4939_s13 + $0x78] sm:$0xff]  }
 0x7dc   : > { %v1652_v21 = vpack.c.bf16 %v1650_v18, %v1650_v18  ;;  %v3548_v18 = vld [vmem:[%s4939_s13 + $0x38] sm:$0xff]   ;;  %3075 = vmatprep.subr.bf16.mxu0 %v3547_v17 }
 0x7dd   : > { %v1653_v23 = vpack.c.bf16 %v1651_v19, %v1651_v19  ;;  %3076 = vmatpush3.bf16.msra.mxu0 %v3548_v18 }
 0x7de   : > { %3127 = vmatprep.subr.bf16.mxu0 %v4132_v0 }
 0x7df   : > { %2158 = vmatprep.mubr.bf16.mxu1 %v1653_v23 }
 0x7e0   : > { %2159 = vmatmul.mubr.bf16.vlgmr.msra.gmra.mrb[8].mxu1 %v1652_v21 }
 0x7e1   : > { %2168 = vmatpush1.bf16.msra.mxu1 %v3485_v37 }
 0x7e2   : > { %2169 = vmatprep.subr.bf16.mxu1 %v3490_v25  ;;  %v3551_v25 = vld [vmem:[#allocation23 + $0x10] sm:$0xff]  }
 0x7e3   : > { %v3592_v39 = vpop.eup %3591 }
 0x7e4   : > { %v1739_v33 = vmul.f32 %v3592_v39, %v4726_v9  ;;  %v1707_v9 = vadd.f32 %v1705_v47, %v1695_v20  ;;  %v3557_v20 = vld [vmem:[#allocation25] sm:$0xff]   ;;  %v3558_v47 = vld [vmem:[#allocation25 + $0x8] sm:$0xff]  }
 0x7e5   : > { %2170 = vmatpush1.bf16.msra.mxu1 %v3488_v27  ;;  %v3553_v27 = vld [vmem:[#allocation23 + $0x20] sm:$0xff]  }
 0x7e6   : > { %2171 = vmatprep.subr.bf16.mxu1 %v3493_v30  ;;  %v1741_v44 = vpack.c.bf16 %v1739_v33, %v1739_v33  ;;  %v1726_v53 = vadd.f32 %v1724_v51, %v1707_v9  ;;  %v3556_v30 = vld [vmem:[#allocation23 + $0x38] sm:$0xff]   ;;  %v3562_v9 = vld [vmem:[#allocation25 + $0x28] sm:$0xff]  }
 0x7e7   : > { %v3564_v51 = vld [vmem:[#allocation25 + $0x38] sm:$0xff]  }
 0x7e8   : > { %2199 = vmatprep.mubr.bf16.mxu1 %v1741_v44  ;;  %v1728_v56 = vsub.f32 0.0, %v1726_v53 }
 0x7e9   : > { %2172 = vmatpush1.bf16.msra.mxu1 %v3491_v32 }
 0x7ea   : > { %2173 = vmatprep.subr.bf16.mxu1 %v3496_v41  ;;  %v1730_v57 = vmul.f32 1.442695, %v1728_v56 }
 0x7ec   : > { %3593 = vpow2.f32 %v1730_v57 }
 0x7ed   : > { %2174 = vmatpush1.bf16.msra.mxu1 %v3494_v45 }
 0x7ee   : > { %2175 = vmatprep.subr.bf16.mxu1 %v3499_v49  ;;  %v3560_v49 = vld [vmem:[#allocation25 + $0x18] sm:$0xff]  }
 0x7f1   : > { %2176 = vmatpush1.bf16.msra.mxu1 %v3497_v50  ;;  %v3563_v50 = vld [vmem:[#allocation25 + $0x30] sm:$0xff]  }
 0x7f2   : > { %2177 = vmatprep.subr.bf16.mxu1 %v3502_v52  ;;  %v2397_v52 = vld [vmem:[%s5021_s6] sm:$0xff] }
 0x7f5   : > { %2178 = vmatpush1.bf16.msra.mxu1 %v3500_v54 }
 0x7f6   : > { %2179 = vmatprep.subr.bf16.mxu1 %v3505_v29  ;;  %v3594_v1 = vpop.eup %3593 }
 0x7f7   : > { %v1734_v3 = vadd.f32 1.0, %v3594_v1 }
 0x7f9   : > { %2180 = vmatpush1.bf16.msra.mxu1 %v3503_v55  ;;  %3595 = vrcp.f32 %v1734_v3 }
 0x7fa   : > { %2181 = vmatprep.subr.bf16.mxu1 %v3508_v11 }
 0x7fd   : > { %2182 = vmatpush1.bf16.msra.mxu1 %v3506_v7 }
 0x7fe   : > { %2183 = vmatprep.subr.bf16.mxu1 %v3511_v58 }
 0x801   : > { %2184 = vmatpush1.bf16.msra.mxu1 %v3509_v59 }
 0x802   : > { %2185 = vmatprep.subr.bf16.mxu1 %v3514_v60 }
 0x803   : > { %v3596_v14 = vpop.eup %3595 }
 0x804   : > { %v1738_v15 = vmul.f32 %v3596_v14, %v4724_v35  ;;  %v3549_v35 = vld [vmem:[#allocation23] sm:$0xff]  }
 0x805   : > { %2186 = vmatpush1.bf16.msra.mxu1 %v3512_v61 }
 0x806   : > { %2187 = vmatprep.subr.bf16.mxu1 %v3517_v62  ;;  %v1740_v16 = vpack.c.bf16 %v1738_v15, %v1738_v15 }
 0x809   : > { %2188 = vmatpush1.bf16.msra.mxu1 %v3515_v63 }
 0x80a   : > { %2189 = vmatprep.subr.bf16.mxu1 %v3520_v2 }
 0x80d   : > { %2190 = vmatpush1.bf16.msra.mxu1 %v3518_v4 }
 0x80e   : > { %2191 = vmatprep.subr.bf16.mxu1 %v3523_v5 }
 0x811   : > { %2192 = vmatpush1.bf16.msra.mxu1 %v3521_v6 }
 0x812   : > { %2193 = vmatprep.subr.bf16.mxu1 %v3526_v8 }
 0x815   : > { %2194 = vmatpush1.bf16.msra.mxu1 %v3524_v10 }
 0x816   : > { %2195 = vmatprep.subr.bf16.mxu1 %v3529_v12 }
 0x819   : > { %2196 = vmatpush1.bf16.msra.mxu1 %v3527_v34 }
 0x81a   : > { %2197 = vmatprep.subr.bf16.mxu1 %v3532_v13 }
 0x81d   : > { %2198 = vmatpush1.bf16.msra.mxu1 %v3530_v40 }
 0x820   : > { %2200 = vmatmul.mubr.bf16.vlgmr.msra.gmra.mrb[8].mxu1 %v1740_v16 }
 0x8f3   : > { %v2201_v19 = vpop.f32.mrb[8].mxu1 }
 0x8f4   : > { %v2203_v36 = vpop.f32.mrb[9].mxu1  ;;  %v2208_v23 = vpack.c.bf16 %v2201_v19, %v2201_v19 }
 0x8f5   : > { %v2209_v21 = vpack.c.bf16 %v2203_v36, %v2203_v36  ;;  %v2205_v22 = vpop.f32.mrb[10].mxu1 }
 0x8f6   : > { %v2206_v37 = vpop.f32.mrb[11].mxu1 }
 0x8f7   : > { %2371 = vmatprep.mubr.bf16.mxu0 %v2209_v21 }
 0x8f8   : > { %2372 = vmatmul.mubr.bf16.vlgmr.msra.gmra.mrb[12].mxu0 %v2208_v23 }
 0x8f9   : > { %3128 = vmatpush3.bf16.msra.mxu0 %v3549_v35  ;;  %3143 = vmatprep.mubr.msk.bf16.mxu0 %vm4133_vm0, %v4132_v0 }
 0x8fa   : > { %3129 = vmatprep.subr.bf16.mxu0 %v4132_v0 }
 0x8fd   : > { %3130 = vmatpush3.bf16.msra.mxu0 %v3550_v24 }
 0x8fe   : > { %3131 = vmatprep.subr.bf16.mxu0 %v4132_v0 }
 0x901   : > { %3132 = vmatpush3.bf16.msra.mxu0 %v3551_v25 }
 0x902   : > { %3133 = vmatprep.subr.bf16.mxu0 %v4132_v0 }
 0x905   : > { %3134 = vmatpush3.bf16.msra.mxu0 %v3552_v26 }
 0x906   : > { %3135 = vmatprep.subr.bf16.mxu0 %v4132_v0 }
 0x909   : > { %3136 = vmatpush3.bf16.msra.mxu0 %v3553_v27 }
 0x90a   : > { %3137 = vmatprep.subr.bf16.mxu0 %v4132_v0 }
 0x90d   : > { %3138 = vmatpush3.bf16.msra.mxu0 %v3554_v28 }
 0x90e   : > { %3139 = vmatprep.subr.bf16.mxu0 %v4132_v0 }
 0x911   : > { %3140 = vmatpush3.bf16.msra.mxu0 %v3555_v43 }
 0x912   : > { %3141 = vmatprep.subr.bf16.mxu0 %v4132_v0 }
 0x915   : > { %3142 = vmatpush3.bf16.msra.mxu0 %v3556_v30 }
 0x916   : > { %3147 = vmatprep.subr.bf16.mxu0 %v4132_v0 }
 0x9cb   : > { %v3077_v39 = vpop.f32.mrb[12].mxu0 }
 0x9cc   : > { %v3078_v32 = vpop.f32.mrb[13].mxu0 }
 0x9cd   : > { %v3079_v33 = vadd.f32 %v3078_v32, %v3077_v39  ;;  %v3080_v42 = vpop.f32.mrb[14].mxu0 }
 0x9ce   : > { %v3081_v38 = vpop.f32.mrb[15].mxu0 }
 0x9cf   : > { %v2374_v41 = vadd.f32 %v3079_v33, %v2242_v31 }
 0x9d1   : > { %v2379_v44 = vmax.f32 %v2374_v41, 0.0 }
 0x9d3   : > { %v2380_v45 = vpack.c.bf16 %v2379_v44, %v2379_v44 }
 0x9d5   : > { %3144 = vmatmul.mubr.bf16.vlgmr.msra.gmra.mrb[16].mxu0 %v2380_v45 }
 0x9d6   : > { %3148 = vmatpush3.bf16.msra.mxu0 %v3557_v20  ;;  %3163 = vmatprep.mubr.msk.bf16.mxu0 %vm4133_vm0, %v4132_v0 }
 0x9d7   : > { %3149 = vmatprep.subr.bf16.mxu0 %v4132_v0 }
 0x9da   : > { %3150 = vmatpush3.bf16.msra.mxu0 %v3558_v47 }
 0x9db   : > { %3151 = vmatprep.subr.bf16.mxu0 %v4132_v0 }
 0x9de   : > { %3152 = vmatpush3.bf16.msra.mxu0 %v3559_v48 }
 0x9df   : > { %3153 = vmatprep.subr.bf16.mxu0 %v4132_v0 }
 0x9e2   : > { %3154 = vmatpush3.bf16.msra.mxu0 %v3560_v49 }
 0x9e3   : > { %3155 = vmatprep.subr.bf16.mxu0 %v4132_v0 }
 0x9e6   : > { %3156 = vmatpush3.bf16.msra.mxu0 %v3561_v46 }
 0x9e7   : > { %3157 = vmatprep.subr.bf16.mxu0 %v4132_v0 }
 0x9ea   : > { %3158 = vmatpush3.bf16.msra.mxu0 %v3562_v9 }
 0x9eb   : > { %3159 = vmatprep.subr.bf16.mxu0 %v4132_v0 }
 0x9ee   : > { %3160 = vmatpush3.bf16.msra.mxu0 %v3563_v50 }
 0x9ef   : > { %3161 = vmatprep.subr.bf16.mxu0 %v4132_v0  ;;  %v2504_v0 = vld [vmem:[%s5022_s16] sm:$0xff] }
 0x9f2   : > { %3162 = vmatpush3.bf16.msra.mxu0 %v3564_v51 }
 0xaa8   : > { %v2480_v53 = vpop.f32.mrb[16].mxu0 }
 0xaa9   : > { %v2481_v54 = vadd.f32 %v2480_v53, %v2397_v52  ;;  %v3145_v29 = vpop.f32.mrb[17].mxu0 }
 0xaaa   : > { %v2483_v56 = vpop.f32.mrb[18].mxu0 }
 0xaab   : > { %v2486_v55 = vmax.f32 %v2481_v54, 0.0  ;;  %v3146_v11 = vpop.f32.mrb[19].mxu0 }
 0xaad   : > { %v2487_v57 = vpack.c.bf16 %v2486_v55, %v2486_v55 }
 0xaaf   : > { %3164 = vmatmul.mubr.bf16.vlgmr.msra.gmra.mrb[20].mxu0 %v2487_v57 }
 0xb82   : > { %v2587_v7 = vpop.f32.mrb[20].mxu0 }
 0xb83   : > { %v2588_v58 = vadd.f32 %v2587_v7, %v2504_v0  ;;  %v3165_v59 = vpop.f32.mrb[21].mxu0 }
 0xb84   : > { %v2590_v60 = vpop.f32.mrb[22].mxu0 }
 0xb85   : > { %2593 = vst [vmem:[%s797_s26] sm:$0xff] %v2588_v58  ;;  %v3166_v61 = vpop.f32.mrb[23].mxu0 }
 0xb86   : > { %4030 = shalt.err (!%p4027_p7)
}
 0xb87   : > { %s4031_s6 = scalar_lea.hbm %s4884_s21, 128  ;;  %s4035_s2 = scalar_lea.hbm %s5024_s22, 1024 }
 0xb88   : > { %p4032_p8 = scmp.ne.s32.totalorder %s4884_s21, %s4031_s6  ;;  %p4036_p0 = scmp.lt.u32.totalorder %s4884_s21, %s5024_s22 }
 0xb89   : > { %p4037_p1 = scmp.lt.u32.totalorder %s4035_s2, %s4031_s6  ;;  %p4039_p5 = scmp.lt.u32.totalorder %s4031_s6, %s4884_s21 }
 0xb8a   : > { %p4033_p11 = pnand %p4032_p8, %p5025_p9 }
 0xb8b   : > { %p4038_p6 = por %p4037_p1, %p4036_p0 }
 0xb8c   : > { %p4034_p13 = pneg %p4033_p11 }
 0xb8d   : > { %p4040_p12 = por %p4039_p5, %p4038_p6 }
 0xb8f   : > { %p4041_p10 = pnand %p4040_p12, %p4034_p13 }
 0xb91   : > { %4044 = shalt.err (!%p4041_p10)
}
 0xb92   : > { %3231 = dma.vmem_to_hbm [thread:$0]  (%p5025_p9), %s4886_s0, 128, %s4884_s21, %s2595_s3  }
 0xb93 PF: > { %s5026_s4 = sld [smem:[#allocation38_spill]]  ;;  %s5027_s26 = sld [smem:[#allocation36_spill]] }
 0xb94   : > { %s5028_s18 = sld [smem:[#allocation42_spill]] }
 0xb99   : > { %p3313_p2 = scmp.ge.s32.totalorder %s5026_s4, 2  ;;  %s2620_s27 = sand.u32 1, %s5027_s26  }
 0xb9a   : > { %p5029_p3 = scmp.ne.s32.totalorder %s5028_s18, 0  ;;  %s2621_s1 = scalar_lea.sflag [#allocation4], %s2620_s27 }
 0xb9c   : > { %p3280_p4 = pnand %p3313_p2, %p5029_p3 }
 0xb9e   : > { %4094 = dma.done.wait (!%p3280_p4), %s2621_s1, 128  }
 0xb9f   : > { %4096 = vsyncadd (!%p3280_p4), %s2621_s1, 4294967168  ;;  %s5030_s21 = sld [smem:[#allocation39_spill]]  ;;  %s5031_s25 = sld [smem:[#allocation37_spill]] }
 0xba0   : > { %s5032_s20 = sld [smem:[#allocation40_spill]]  ;;  %s5033_s0 = smov %s4103_s30 }
 0xba5   : > { %p37_p7 = scmp.ge.s32.totalorder %s5030_s21, 10   ;;  %s5034_s30 = smov %s5031_s25 }
 0xba7   :  { %39 = sbr.rel (!%p37_p7) target bundleno = 23 (0x17), region = 192 }
 0xbae   :  { %2626 = vsyncpa [#allocation3], 1 }
 0xbaf   :  { %2628 = vsyncpa [#allocation3 + $0x1], 1 }
 0xbb0   :  { %2629 = vsyncpa [#allocation6], 1 }
 0xbb1   :  { %2630 = vsyncpa [#allocation9], 1 }
 0xbb2   :  { %2631 = vsyncpa [#allocation12], 1 }
 0xbb3   :  { %2632 = vsyncpa [#allocation15], 1 }
 0xbb4   :  { %2633 = vsyncpa [#allocation18], 1 }
 0xbb5   :  { %2634 = vsyncpa [#allocation21], 1 }
 0xbb6   :  { %2635 = vsyncpa [#allocation24], 1 }
 0xbb7   :  { %2636 = vsyncpa [#allocation4], 1 }
 0xbb8   :  { %2638 = vsyncpa [#allocation4 + $0x1], 1 }

</bundles_post_ra>
